<compile_context>
chip_gen: v7x
topology: tpu7x:2x2x1
jax: 0.10.0
libtpu: 0.0.40
codegen_flags: <defaults>
</compile_context>

<pallas_src>
import functools

import jax
import jax.numpy as jnp
from jax import lax
from jax.experimental import pallas as pl
from jax.experimental.pallas import tpu as pltpu

_HALO_BLK = 8  # granularity (rows) of the H-halo fetch; keeps halo blocks 8-sublane aligned


def basic_block_kernel(x_ref, xtop_ref, xbot_ref,
                       w1_ref, s1_ref, b1_ref,
                       w2_ref, s2_ref, b2_ref,
                       o_ref, *, tile_h, W, Wf, Cin, Cout):
    """Fused conv3x3+BN+ReLU -> conv3x3+BN -> +identity -> ReLU for one (batch, H-tile).

    Shapes per grid step (NHWC, width host-padded to Wxp = Wf + 2):
      x_ref    : (1, tile_h, Wxp, Cin)   current row tile of x (also the residual)
      xtop_ref : (1, 8, Wxp, Cin)        8-row block containing the 2 halo rows above
      xbot_ref : (1, 8, Wxp, Cin)        8-row block containing the 2 halo rows below
      w1_ref   : (9, Cin, Cout)  f32     conv1 weights, (kh*3 + kw) major
      s1/b1    : (1, Cout)       f32     folded BN1 scale / bias
      w2_ref   : (9, Cout, Cout) f32     conv2 weights
      s2/b2    : (1, Cout)       f32     folded BN2 scale / bias
      o_ref    : (1, tile_h, W, Cout)
    """
    t = pl.program_id(1)
    n_t = pl.num_programs(1)
    f32 = jnp.float32

    x_main = x_ref[0]                                             # (TH, Wxp, Cin)

    # Scalar border masks (conv zero padding along H at the image edges).
    has_top = (t > 0).astype(f32)
    has_bot = (t < n_t - 1).astype(f32)

    # Two halo rows above / below this tile, zeroed at the image border.
    top = xtop_ref[0, _HALO_BLK - 2:_HALO_BLK] * has_top          # (2, Wxp, Cin)
    bot = xbot_ref[0, 0:2] * has_bot                              # (2, Wxp, Cin)

    # x rows [t*TH-2, (t+1)*TH+2); concat is along the untiled major axis only.
    xrows = jnp.concatenate([top, x_main, bot], axis=0)           # (TH+4, Wxp, Cin)

    w1 = w1_ref[...]                                              # (9, Cin, Cout)
    w2 = w2_ref[...]                                              # (9, Cout, Cout)

    # ---- conv1 + BN1 + ReLU over an Wf-wide frame (frame col p = image col p-1) ----
    r1 = tile_h + 2                       # rows of y1 needed by conv2 (1-row halo)
    acc1 = jnp.zeros((r1 * Wf, Cout), f32)
    for kh in range(3):
        for kw in range(3):
            win = xrows[kh:kh + r1, kw:kw + Wf, :].reshape(r1 * Wf, Cin)
            acc1 = acc1 + jnp.dot(win, w1[kh * 3 + kw],
                                  preferred_element_type=f32)
    y1 = jnp.maximum(acc1 * s1_ref[...] + b1_ref[...], 0.0)
    y1 = y1.reshape(r1, Wf, Cout)

    # conv2's zero padding: frame cols 0 and >= W+1 lie outside the image, as do
    # the first / last frame rows when this tile touches the image border.
    col = lax.broadcasted_iota(jnp.int32, (Wf, Cout), 0)
    y1 = jnp.where((col == 0) | (col >= W + 1), 0.0, y1)
    y1 = jnp.concatenate(
        [y1[0:1] * has_top, y1[1:r1 - 1], y1[r1 - 1:r1] * has_bot], axis=0)

    # ---- conv2 + BN2 (no activation before the residual add) ----
    acc2 = jnp.zeros((tile_h * W, Cout), f32)
    for kh in range(3):
        for kw in range(3):
            win = y1[kh:kh + tile_h, kw:kw + W, :].reshape(tile_h * W, Cout)
            acc2 = acc2 + jnp.dot(win, w2[kh * 3 + kw],
                                  preferred_element_type=f32)
    y2 = (acc2 * s2_ref[...] + b2_ref[...]).reshape(tile_h, W, Cout)

    # ---- residual add (identity comes from the same x block) + ReLU ----
    xres = x_main[:, 2:2 + W, :]                                  # drop the W padding
    o_ref[0] = jnp.maximum(y2 + xres, 0.0)


def basic_block_pallas(x_nchw, params, *, tile_h=None):
    """x_nchw: (N, C, H, W) float32. Returns (N, C, H, W) float32."""
    x = jnp.transpose(x_nchw, (0, 2, 3, 1))                        # -> NHWC
    N, H, W, Cin = x.shape
    Cout = params["w1_hwio"].shape[-1]
    assert Cin == Cout, "identity residual requires in_channels == out_channels"
    assert H % _HALO_BLK == 0, "H must be a multiple of 8"
    assert W % _HALO_BLK == 0, "W must be a multiple of 8"  # keeps reshapes layout-preserving

    if tile_h is None:  # largest row tile (<= 64) that divides H and is a multiple of 8
        tile_h = max(c for c in range(_HALO_BLK, min(H, 64) + 1, _HALO_BLK)
                     if H % c == 0)
    assert H % tile_h == 0 and tile_h % _HALO_BLK == 0
    n_t = H // tile_h
    blk_h = tile_h // _HALO_BLK
    h_blocks = H // _HALO_BLK

    # conv1 output frame width (>= W+2, multiple of 8) and host-padded input width.
    Wf = ((W + 2 + 7) // 8) * 8
    Wxp = Wf + 2
    xp = jnp.pad(x, ((0, 0), (0, 0), (2, Wxp - W - 2), (0, 0)))    # zero W padding

    w1 = params["w1_hwio"].reshape(9, Cin, Cout).astype(jnp.float32)
    w2 = params["w2_hwio"].reshape(9, Cout, Cout).astype(jnp.float32)
    s1 = params["s1"].reshape(1, Cout).astype(jnp.float32)
    b1 = params["b1"].reshape(1, Cout).astype(jnp.float32)
    s2 = params["s2"].reshape(1, Cout).astype(jnp.float32)
    b2 = params["b2"].reshape(1, Cout).astype(jnp.float32)

    def main_map(b, t):
        return (b, t, 0, 0)

    def top_map(b, t):   # 8-row block holding image rows [t*tile_h - 2, t*tile_h)
        return (b, jnp.maximum(t * blk_h - 1, 0), 0, 0)

    def bot_map(b, t):   # 8-row block holding image rows [(t+1)*tile_h, (t+1)*tile_h + 2)
        return (b, jnp.minimum((t + 1) * blk_h, h_blocks - 1), 0, 0)

    def w_map(b, t):
        return (0, 0, 0)

    def v_map(b, t):
        return (0, 0)

    kernel = functools.partial(basic_block_kernel, tile_h=tile_h, W=W, Wf=Wf,
                               Cin=Cin, Cout=Cout)

    # Advisory cost estimate for the XLA scheduler.
    flops = (2 * 9 * N * (H + 2 * n_t) * Wf * Cin * Cout
             + 2 * 9 * N * H * W * Cout * Cout)
    bytes_accessed = (4 * N * H * Wxp * Cin + 4 * N * H * W * Cout
                      + 4 * N * n_t * 2 * _HALO_BLK * Wxp * Cin
                      + 4 * 9 * Cout * (Cin + Cout) + 4 * 4 * Cout)

    out = pl.pallas_call(
        kernel,
        out_shape=jax.ShapeDtypeStruct((N, H, W, Cout), jnp.float32),
        grid_spec=pltpu.PrefetchScalarGridSpec(
            num_scalar_prefetch=0,
            grid=(N, n_t),
            in_specs=[
                pl.BlockSpec((1, tile_h, Wxp, Cin), main_map),
                pl.BlockSpec((1, _HALO_BLK, Wxp, Cin), top_map),
                pl.BlockSpec((1, _HALO_BLK, Wxp, Cin), bot_map),
                pl.BlockSpec((9, Cin, Cout), w_map),
                pl.BlockSpec((1, Cout), v_map),
                pl.BlockSpec((1, Cout), v_map),
                pl.BlockSpec((9, Cout, Cout), w_map),
                pl.BlockSpec((1, Cout), v_map),
                pl.BlockSpec((1, Cout), v_map),
            ],
            out_specs=pl.BlockSpec((1, tile_h, W, Cout), main_map),
        ),
        compiler_params=pltpu.CompilerParams(
            dimension_semantics=("parallel", "parallel")),
        cost_estimate=pl.CostEstimate(flops=flops, transcendentals=0,
                                      bytes_accessed=bytes_accessed),
    )(xp, xp, xp, w1, s1, b1, w2, s2, b2)

    return jnp.transpose(out, (0, 3, 1, 2))                        # -> NCHW


def basic_block_reference(x_nchw, params):
    """Pure-JAX reference (inference-mode BN), NCHW in/out, f32 throughout."""
    x = jnp.transpose(x_nchw, (0, 2, 3, 1))
    dn = ("NHWC", "HWIO", "NHWC")
    y = lax.conv_general_dilated(x, params["w1_hwio"], (1, 1), "SAME",
                                 dimension_numbers=dn,
                                 precision=lax.Precision.HIGHEST)
    y = jnp.maximum(y * params["s1"] + params["b1"], 0.0)
    y2 = lax.conv_general_dilated(y, params["w2_hwio"], (1, 1), "SAME",
                                  dimension_numbers=dn,
                                  precision=lax.Precision.HIGHEST)
    y2 = y2 * params["s2"] + params["b2"]
    out = jnp.maximum(y2 + x, 0.0)
    return jnp.transpose(out, (0, 3, 1, 2))


def make_params(key, cin, cout, eps=1e-5):
    ks = jax.random.split(key, 10)
    # PyTorch conv weights are OIHW; build them that way then convert to HWIO.
    w1_oihw = 0.1 * jax.random.normal(ks[0], (cout, cin, 3, 3), jnp.float32)
    w2_oihw = 0.1 * jax.random.normal(ks[1], (cout, cout, 3, 3), jnp.float32)
    w1_hwio = jnp.transpose(w1_oihw, (2, 3, 1, 0))
    w2_hwio = jnp.transpose(w2_oihw, (2, 3, 1, 0))

    def bn(kg, kb, km, kv):
        gamma = 1.0 + 0.1 * jax.random.normal(kg, (cout,), jnp.float32)
        beta = 0.1 * jax.random.normal(kb, (cout,), jnp.float32)
        mean = 0.1 * jax.random.normal(km, (cout,), jnp.float32)
        var = jax.random.uniform(kv, (cout,), jnp.float32, 0.5, 1.5)
        scale = gamma / jnp.sqrt(var + eps)
        bias = beta - mean * scale
        return scale, bias

    s1, b1 = bn(ks[2], ks[3], ks[4], ks[5])
    s2, b2 = bn(ks[6], ks[7], ks[8], ks[9])
    return dict(w1_hwio=w1_hwio, w2_hwio=w2_hwio, s1=s1, b1=b1, s2=s2, b2=b2)


if __name__ == "__main__":
    key = jax.random.PRNGKey(0)
    kx, kp = jax.random.split(key)

    N, C, H, W = 2, 8, 16, 16  # identity residual: Cin == Cout, stride 1
    x = jax.random.normal(kx, (N, C, H, W), jnp.float32)
    params = make_params(kp, C, C)

    ref = jax.block_until_ready(basic_block_reference(x, params))

    # tile_h=8 exercises the H-tiled grid (grid = (2, 2)) including halo fetches;
    # tile_h=16 exercises the single-tile (fully masked halo) path.
    for th in (8, 16):
        out = jax.block_until_ready(basic_block_pallas(x, params, tile_h=th))
        assert out.shape == (N, C, H, W)
        err = float(jnp.max(jnp.abs(out - ref)))
        assert jnp.allclose(out, ref, atol=2e-2, rtol=2e-2), \
            f"tile_h={th}: max abs err {err}"

    print("KERNEL_OK")
</pallas_src>

<mosaic_0001>
module attributes {stable_mosaic.version = 11 : i64} {
  func.func @basic_block_kernel(%arg0: i32, %arg1: i32, %arg2: memref<1x8x26x8xf32, #tpu.memory_space<vmem>>, %arg3: memref<1x8x26x8xf32, #tpu.memory_space<vmem>>, %arg4: memref<1x8x26x8xf32, #tpu.memory_space<vmem>>, %arg5: memref<9x8x8xf32, #tpu.memory_space<vmem>>, %arg6: memref<1x8xf32, #tpu.memory_space<vmem>>, %arg7: memref<1x8xf32, #tpu.memory_space<vmem>>, %arg8: memref<9x8x8xf32, #tpu.memory_space<vmem>>, %arg9: memref<1x8xf32, #tpu.memory_space<vmem>>, %arg10: memref<1x8xf32, #tpu.memory_space<vmem>>, %arg11: memref<1x8x16x8xf32, #tpu.memory_space<vmem>>) attributes {dimension_semantics = [#tpu.dimension_semantics<parallel>, #tpu.dimension_semantics<parallel>], iteration_bounds = array<i64: 2, 2>, scalar_prefetch = 0 : i64, scratch_operands = 0 : i64, tpu.core_type = #tpu.core_type<tc>, window_params = [{transform_indices = @transform_0, window_bounds = array<i64: 1, 8, 26, 8>}, {transform_indices = @transform_1, window_bounds = array<i64: 1, 8, 26, 8>}, {transform_indices = @transform_2, window_bounds = array<i64: 1, 8, 26, 8>}, {pipeline_mode = #tpu.pipeline_mode<synchronous>, transform_indices = @transform_3, window_bounds = array<i64: 9, 8, 8>}, {pipeline_mode = #tpu.pipeline_mode<synchronous>, transform_indices = @transform_4, window_bounds = array<i64: 1, 8>}, {pipeline_mode = #tpu.pipeline_mode<synchronous>, transform_indices = @transform_5, window_bounds = array<i64: 1, 8>}, {pipeline_mode = #tpu.pipeline_mode<synchronous>, transform_indices = @transform_6, window_bounds = array<i64: 9, 8, 8>}, {pipeline_mode = #tpu.pipeline_mode<synchronous>, transform_indices = @transform_7, window_bounds = array<i64: 1, 8>}, {pipeline_mode = #tpu.pipeline_mode<synchronous>, transform_indices = @transform_8, window_bounds = array<i64: 1, 8>}, {transform_indices = @transform_9, window_bounds = array<i64: 1, 8, 16, 8>}]} {
    %c0 = arith.constant 0 : index
    %c0_0 = arith.constant 0 : index
    %c0_1 = arith.constant 0 : index
    %c0_2 = arith.constant 0 : index
    %0 = vector.load %arg2[%c0, %c0_0, %c0_1, %c0_2] : memref<1x8x26x8xf32, #tpu.memory_space<vmem>>, vector<1x8x26x8xf32>
    %1 = vector.shape_cast %0 : vector<1x8x26x8xf32> to vector<8x26x8xf32>
    %c0_i32 = arith.constant 0 : i32
    %2 = arith.cmpi sgt, %arg1, %c0_i32 : i32
    %3 = arith.extui %2 : i1 to i32
    %4 = arith.sitofp %3 : i32 to f32
    %c1_i32 = arith.constant 1 : i32
    %5 = arith.cmpi slt, %arg1, %c1_i32 : i32
    %6 = arith.extui %5 : i1 to i32
    %7 = arith.sitofp %6 : i32 to f32
    %c0_3 = arith.constant 0 : index
    %c6 = arith.constant 6 : index
    %c0_4 = arith.constant 0 : index
    %c0_5 = arith.constant 0 : index
    %8 = vector.load %arg3[%c0_3, %c6, %c0_4, %c0_5] : memref<1x8x26x8xf32, #tpu.memory_space<vmem>>, vector<1x2x26x8xf32>
    %9 = vector.shape_cast %8 : vector<1x2x26x8xf32> to vector<2x26x8xf32>
    %10 = vector.broadcast %4 : f32 to vector<2x26x8xf32>
    %11 = arith.mulf %9, %10 : vector<2x26x8xf32>
    %c0_6 = arith.constant 0 : index
    %c0_7 = arith.constant 0 : index
    %c0_8 = arith.constant 0 : index
    %c0_9 = arith.constant 0 : index
    %12 = vector.load %arg4[%c0_6, %c0_7, %c0_8, %c0_9] : memref<1x8x26x8xf32, #tpu.memory_space<vmem>>, vector<1x2x26x8xf32>
    %13 = vector.shape_cast %12 : vector<1x2x26x8xf32> to vector<2x26x8xf32>
    %14 = vector.broadcast %7 : f32 to vector<2x26x8xf32>
    %15 = arith.mulf %13, %14 : vector<2x26x8xf32>
    %16 = tpu.concatenate %11, %1, %15 in 0 : vector<2x26x8xf32>, vector<8x26x8xf32>, vector<2x26x8xf32> -> vector<12x26x8xf32>
    %c0_10 = arith.constant 0 : index
    %c0_11 = arith.constant 0 : index
    %c0_12 = arith.constant 0 : index
    %17 = vector.load %arg5[%c0_10, %c0_11, %c0_12] : memref<9x8x8xf32, #tpu.memory_space<vmem>>, vector<9x8x8xf32>
    %c0_13 = arith.constant 0 : index
    %c0_14 = arith.constant 0 : index
    %c0_15 = arith.constant 0 : index
    %18 = vector.load %arg8[%c0_13, %c0_14, %c0_15] : memref<9x8x8xf32, #tpu.memory_space<vmem>>, vector<9x8x8xf32>
    %cst = arith.constant 0.000000e+00 : f32
    %19 = vector.broadcast %cst : f32 to vector<240x8xf32>
    %20 = vector.extract_strided_slice %16 {offsets = [0, 0, 0], sizes = [10, 24, 8], strides = [1, 1, 1]} : vector<12x26x8xf32> to vector<10x24x8xf32>
    %21 = vector.shape_cast %20 : vector<10x24x8xf32> to vector<240x8xf32>
    %22 = vector.extract_strided_slice %17 {offsets = [0, 0, 0], sizes = [1, 8, 8], strides = [1, 1, 1]} : vector<9x8x8xf32> to vector<1x8x8xf32>
    %23 = vector.shape_cast %22 : vector<1x8x8xf32> to vector<8x8xf32>
    %cst_16 = arith.constant dense<0.000000e+00> : vector<240x8xf32>
    %24 = tpu.matmul %21, %23, %cst_16 {dimension_numbers = #tpu.dot_dimension_numbers<[1], [0], [0], [1], [0, 0, 1, 1], [], []>} : vector<240x8xf32>, vector<8x8xf32>, vector<240x8xf32> -> vector<240x8xf32>
    %25 = arith.addf %19, %24 : vector<240x8xf32>
    %26 = vector.extract_strided_slice %16 {offsets = [0, 1, 0], sizes = [10, 24, 8], strides = [1, 1, 1]} : vector<12x26x8xf32> to vector<10x24x8xf32>
    %27 = vector.shape_cast %26 : vector<10x24x8xf32> to vector<240x8xf32>
    %28 = vector.extract_strided_slice %17 {offsets = [1, 0, 0], sizes = [1, 8, 8], strides = [1, 1, 1]} : vector<9x8x8xf32> to vector<1x8x8xf32>
    %29 = vector.shape_cast %28 : vector<1x8x8xf32> to vector<8x8xf32>
    %cst_17 = arith.constant dense<0.000000e+00> : vector<240x8xf32>
    %30 = tpu.matmul %27, %29, %cst_17 {dimension_numbers = #tpu.dot_dimension_numbers<[1], [0], [0], [1], [0, 0, 1, 1], [], []>} : vector<240x8xf32>, vector<8x8xf32>, vector<240x8xf32> -> vector<240x8xf32>
    %31 = arith.addf %25, %30 : vector<240x8xf32>
    %32 = vector.extract_strided_slice %16 {offsets = [0, 2, 0], sizes = [10, 24, 8], strides = [1, 1, 1]} : vector<12x26x8xf32> to vector<10x24x8xf32>
    %33 = vector.shape_cast %32 : vector<10x24x8xf32> to vector<240x8xf32>
    %34 = vector.extract_strided_slice %17 {offsets = [2, 0, 0], sizes = [1, 8, 8], strides = [1, 1, 1]} : vector<9x8x8xf32> to vector<1x8x8xf32>
    %35 = vector.shape_cast %34 : vector<1x8x8xf32> to vector<8x8xf32>
    %cst_18 = arith.constant dense<0.000000e+00> : vector<240x8xf32>
    %36 = tpu.matmul %33, %35, %cst_18 {dimension_numbers = #tpu.dot_dimension_numbers<[1], [0], [0], [1], [0, 0, 1, 1], [], []>} : vector<240x8xf32>, vector<8x8xf32>, vector<240x8xf32> -> vector<240x8xf32>
    %37 = arith.addf %31, %36 : vector<240x8xf32>
    %38 = vector.extract_strided_slice %16 {offsets = [1, 0, 0], sizes = [10, 24, 8], strides = [1, 1, 1]} : vector<12x26x8xf32> to vector<10x24x8xf32>
    %39 = vector.shape_cast %38 : vector<10x24x8xf32> to vector<240x8xf32>
    %40 = vector.extract_strided_slice %17 {offsets = [3, 0, 0], sizes = [1, 8, 8], strides = [1, 1, 1]} : vector<9x8x8xf32> to vector<1x8x8xf32>
    %41 = vector.shape_cast %40 : vector<1x8x8xf32> to vector<8x8xf32>
    %cst_19 = arith.constant dense<0.000000e+00> : vector<240x8xf32>
    %42 = tpu.matmul %39, %41, %cst_19 {dimension_numbers = #tpu.dot_dimension_numbers<[1], [0], [0], [1], [0, 0, 1, 1], [], []>} : vector<240x8xf32>, vector<8x8xf32>, vector<240x8xf32> -> vector<240x8xf32>
    %43 = arith.addf %37, %42 : vector<240x8xf32>
    %44 = vector.extract_strided_slice %16 {offsets = [1, 1, 0], sizes = [10, 24, 8], strides = [1, 1, 1]} : vector<12x26x8xf32> to vector<10x24x8xf32>
    %45 = vector.shape_cast %44 : vector<10x24x8xf32> to vector<240x8xf32>
    %46 = vector.extract_strided_slice %17 {offsets = [4, 0, 0], sizes = [1, 8, 8], strides = [1, 1, 1]} : vector<9x8x8xf32> to vector<1x8x8xf32>
    %47 = vector.shape_cast %46 : vector<1x8x8xf32> to vector<8x8xf32>
    %cst_20 = arith.constant dense<0.000000e+00> : vector<240x8xf32>
    %48 = tpu.matmul %45, %47, %cst_20 {dimension_numbers = #tpu.dot_dimension_numbers<[1], [0], [0], [1], [0, 0, 1, 1], [], []>} : vector<240x8xf32>, vector<8x8xf32>, vector<240x8xf32> -> vector<240x8xf32>
    %49 = arith.addf %43, %48 : vector<240x8xf32>
    %50 = vector.extract_strided_slice %16 {offsets = [1, 2, 0], sizes = [10, 24, 8], strides = [1, 1, 1]} : vector<12x26x8xf32> to vector<10x24x8xf32>
    %51 = vector.shape_cast %50 : vector<10x24x8xf32> to vector<240x8xf32>
    %52 = vector.extract_strided_slice %17 {offsets = [5, 0, 0], sizes = [1, 8, 8], strides = [1, 1, 1]} : vector<9x8x8xf32> to vector<1x8x8xf32>
    %53 = vector.shape_cast %52 : vector<1x8x8xf32> to vector<8x8xf32>
    %cst_21 = arith.constant dense<0.000000e+00> : vector<240x8xf32>
    %54 = tpu.matmul %51, %53, %cst_21 {dimension_numbers = #tpu.dot_dimension_numbers<[1], [0], [0], [1], [0, 0, 1, 1], [], []>} : vector<240x8xf32>, vector<8x8xf32>, vector<240x8xf32> -> vector<240x8xf32>
    %55 = arith.addf %49, %54 : vector<240x8xf32>
    %56 = vector.extract_strided_slice %16 {offsets = [2, 0, 0], sizes = [10, 24, 8], strides = [1, 1, 1]} : vector<12x26x8xf32> to vector<10x24x8xf32>
    %57 = vector.shape_cast %56 : vector<10x24x8xf32> to vector<240x8xf32>
    %58 = vector.extract_strided_slice %17 {offsets = [6, 0, 0], sizes = [1, 8, 8], strides = [1, 1, 1]} : vector<9x8x8xf32> to vector<1x8x8xf32>
    %59 = vector.shape_cast %58 : vector<1x8x8xf32> to vector<8x8xf32>
    %cst_22 = arith.constant dense<0.000000e+00> : vector<240x8xf32>
    %60 = tpu.matmul %57, %59, %cst_22 {dimension_numbers = #tpu.dot_dimension_numbers<[1], [0], [0], [1], [0, 0, 1, 1], [], []>} : vector<240x8xf32>, vector<8x8xf32>, vector<240x8xf32> -> vector<240x8xf32>
    %61 = arith.addf %55, %60 : vector<240x8xf32>
    %62 = vector.extract_strided_slice %16 {offsets = [2, 1, 0], sizes = [10, 24, 8], strides = [1, 1, 1]} : vector<12x26x8xf32> to vector<10x24x8xf32>
    %63 = vector.shape_cast %62 : vector<10x24x8xf32> to vector<240x8xf32>
    %64 = vector.extract_strided_slice %17 {offsets = [7, 0, 0], sizes = [1, 8, 8], strides = [1, 1, 1]} : vector<9x8x8xf32> to vector<1x8x8xf32>
    %65 = vector.shape_cast %64 : vector<1x8x8xf32> to vector<8x8xf32>
    %cst_23 = arith.constant dense<0.000000e+00> : vector<240x8xf32>
    %66 = tpu.matmul %63, %65, %cst_23 {dimension_numbers = #tpu.dot_dimension_numbers<[1], [0], [0], [1], [0, 0, 1, 1], [], []>} : vector<240x8xf32>, vector<8x8xf32>, vector<240x8xf32> -> vector<240x8xf32>
    %67 = arith.addf %61, %66 : vector<240x8xf32>
    %68 = vector.extract_strided_slice %16 {offsets = [2, 2, 0], sizes = [10, 24, 8], strides = [1, 1, 1]} : vector<12x26x8xf32> to vector<10x24x8xf32>
    %69 = vector.shape_cast %68 : vector<10x24x8xf32> to vector<240x8xf32>
    %70 = vector.extract_strided_slice %17 {offsets = [8, 0, 0], sizes = [1, 8, 8], strides = [1, 1, 1]} : vector<9x8x8xf32> to vector<1x8x8xf32>
    %71 = vector.shape_cast %70 : vector<1x8x8xf32> to vector<8x8xf32>
    %cst_24 = arith.constant dense<0.000000e+00> : vector<240x8xf32>
    %72 = tpu.matmul %69, %71, %cst_24 {dimension_numbers = #tpu.dot_dimension_numbers<[1], [0], [0], [1], [0, 0, 1, 1], [], []>} : vector<240x8xf32>, vector<8x8xf32>, vector<240x8xf32> -> vector<240x8xf32>
    %73 = arith.addf %67, %72 : vector<240x8xf32>
    %c0_25 = arith.constant 0 : index
    %c0_26 = arith.constant 0 : index
    %74 = vector.load %arg6[%c0_25, %c0_26] : memref<1x8xf32, #tpu.memory_space<vmem>>, vector<1x8xf32>
    %75 = vector.broadcast %74 : vector<1x8xf32> to vector<240x8xf32>
    %76 = arith.mulf %73, %75 : vector<240x8xf32>
    %c0_27 = arith.constant 0 : index
    %c0_28 = arith.constant 0 : index
    %77 = vector.load %arg7[%c0_27, %c0_28] : memref<1x8xf32, #tpu.memory_space<vmem>>, vector<1x8xf32>
    %78 = vector.broadcast %77 : vector<1x8xf32> to vector<240x8xf32>
    %79 = arith.addf %76, %78 : vector<240x8xf32>
    %cst_29 = arith.constant 0.000000e+00 : f32
    %80 = vector.broadcast %cst_29 : f32 to vector<240x8xf32>
    %81 = arith.maximumf %79, %80 : vector<240x8xf32>
    %82 = vector.shape_cast %81 : vector<240x8xf32> to vector<10x24x8xf32>
    %83 = tpu.iota {dimensions = array<i32: 0>} : vector<24x8xi32>
    %c0_i32_30 = arith.constant 0 : i32
    %84 = vector.broadcast %c0_i32_30 : i32 to vector<24x8xi32>
    %85 = arith.cmpi eq, %83, %84 : vector<24x8xi32>
    %c17_i32 = arith.constant 17 : i32
    %86 = vector.broadcast %c17_i32 : i32 to vector<24x8xi32>
    %87 = arith.cmpi sge, %83, %86 : vector<24x8xi32>
    %88 = arith.ori %85, %87 : vector<24x8xi1>
    %cst_31 = arith.constant 0.000000e+00 : f32
    %89 = vector.shape_cast %88 : vector<24x8xi1> to vector<1x24x8xi1>
    %90 = vector.broadcast %89 : vector<1x24x8xi1> to vector<10x24x8xi1>
    %91 = vector.broadcast %cst_31 : f32 to vector<10x24x8xf32>
    %92 = arith.select %90, %91, %82 : vector<10x24x8xi1>, vector<10x24x8xf32>
    %93 = vector.extract_strided_slice %92 {offsets = [0, 0, 0], sizes = [1, 24, 8], strides = [1, 1, 1]} : vector<10x24x8xf32> to vector<1x24x8xf32>
    %94 = vector.broadcast %4 : f32 to vector<1x24x8xf32>
    %95 = arith.mulf %93, %94 : vector<1x24x8xf32>
    %96 = vector.extract_strided_slice %92 {offsets = [1, 0, 0], sizes = [8, 24, 8], strides = [1, 1, 1]} : vector<10x24x8xf32> to vector<8x24x8xf32>
    %97 = vector.extract_strided_slice %92 {offsets = [9, 0, 0], sizes = [1, 24, 8], strides = [1, 1, 1]} : vector<10x24x8xf32> to vector<1x24x8xf32>
    %98 = vector.broadcast %7 : f32 to vector<1x24x8xf32>
    %99 = arith.mulf %97, %98 : vector<1x24x8xf32>
    %100 = tpu.concatenate %95, %96, %99 in 0 : vector<1x24x8xf32>, vector<8x24x8xf32>, vector<1x24x8xf32> -> vector<10x24x8xf32>
    %cst_32 = arith.constant 0.000000e+00 : f32
    %101 = vector.broadcast %cst_32 : f32 to vector<128x8xf32>
    %102 = vector.extract_strided_slice %100 {offsets = [0, 0, 0], sizes = [8, 16, 8], strides = [1, 1, 1]} : vector<10x24x8xf32> to vector<8x16x8xf32>
    %103 = vector.shape_cast %102 : vector<8x16x8xf32> to vector<128x8xf32>
    %104 = vector.extract_strided_slice %18 {offsets = [0, 0, 0], sizes = [1, 8, 8], strides = [1, 1, 1]} : vector<9x8x8xf32> to vector<1x8x8xf32>
    %105 = vector.shape_cast %104 : vector<1x8x8xf32> to vector<8x8xf32>
    %cst_33 = arith.constant dense<0.000000e+00> : vector<128x8xf32>
    %106 = tpu.matmul %103, %105, %cst_33 {dimension_numbers = #tpu.dot_dimension_numbers<[1], [0], [0], [1], [0, 0, 1, 1], [], []>} : vector<128x8xf32>, vector<8x8xf32>, vector<128x8xf32> -> vector<128x8xf32>
    %107 = arith.addf %101, %106 : vector<128x8xf32>
    %108 = vector.extract_strided_slice %100 {offsets = [0, 1, 0], sizes = [8, 16, 8], strides = [1, 1, 1]} : vector<10x24x8xf32> to vector<8x16x8xf32>
    %109 = vector.shape_cast %108 : vector<8x16x8xf32> to vector<128x8xf32>
    %110 = vector.extract_strided_slice %18 {offsets = [1, 0, 0], sizes = [1, 8, 8], strides = [1, 1, 1]} : vector<9x8x8xf32> to vector<1x8x8xf32>
    %111 = vector.shape_cast %110 : vector<1x8x8xf32> to vector<8x8xf32>
    %cst_34 = arith.constant dense<0.000000e+00> : vector<128x8xf32>
    %112 = tpu.matmul %109, %111, %cst_34 {dimension_numbers = #tpu.dot_dimension_numbers<[1], [0], [0], [1], [0, 0, 1, 1], [], []>} : vector<128x8xf32>, vector<8x8xf32>, vector<128x8xf32> -> vector<128x8xf32>
    %113 = arith.addf %107, %112 : vector<128x8xf32>
    %114 = vector.extract_strided_slice %100 {offsets = [0, 2, 0], sizes = [8, 16, 8], strides = [1, 1, 1]} : vector<10x24x8xf32> to vector<8x16x8xf32>
    %115 = vector.shape_cast %114 : vector<8x16x8xf32> to vector<128x8xf32>
    %116 = vector.extract_strided_slice %18 {offsets = [2, 0, 0], sizes = [1, 8, 8], strides = [1, 1, 1]} : vector<9x8x8xf32> to vector<1x8x8xf32>
    %117 = vector.shape_cast %116 : vector<1x8x8xf32> to vector<8x8xf32>
    %cst_35 = arith.constant dense<0.000000e+00> : vector<128x8xf32>
    %118 = tpu.matmul %115, %117, %cst_35 {dimension_numbers = #tpu.dot_dimension_numbers<[1], [0], [0], [1], [0, 0, 1, 1], [], []>} : vector<128x8xf32>, vector<8x8xf32>, vector<128x8xf32> -> vector<128x8xf32>
    %119 = arith.addf %113, %118 : vector<128x8xf32>
    %120 = vector.extract_strided_slice %100 {offsets = [1, 0, 0], sizes = [8, 16, 8], strides = [1, 1, 1]} : vector<10x24x8xf32> to vector<8x16x8xf32>
    %121 = vector.shape_cast %120 : vector<8x16x8xf32> to vector<128x8xf32>
    %122 = vector.extract_strided_slice %18 {offsets = [3, 0, 0], sizes = [1, 8, 8], strides = [1, 1, 1]} : vector<9x8x8xf32> to vector<1x8x8xf32>
    %123 = vector.shape_cast %122 : vector<1x8x8xf32> to vector<8x8xf32>
    %cst_36 = arith.constant dense<0.000000e+00> : vector<128x8xf32>
    %124 = tpu.matmul %121, %123, %cst_36 {dimension_numbers = #tpu.dot_dimension_numbers<[1], [0], [0], [1], [0, 0, 1, 1], [], []>} : vector<128x8xf32>, vector<8x8xf32>, vector<128x8xf32> -> vector<128x8xf32>
    %125 = arith.addf %119, %124 : vector<128x8xf32>
    %126 = vector.extract_strided_slice %100 {offsets = [1, 1, 0], sizes = [8, 16, 8], strides = [1, 1, 1]} : vector<10x24x8xf32> to vector<8x16x8xf32>
    %127 = vector.shape_cast %126 : vector<8x16x8xf32> to vector<128x8xf32>
    %128 = vector.extract_strided_slice %18 {offsets = [4, 0, 0], sizes = [1, 8, 8], strides = [1, 1, 1]} : vector<9x8x8xf32> to vector<1x8x8xf32>
    %129 = vector.shape_cast %128 : vector<1x8x8xf32> to vector<8x8xf32>
    %cst_37 = arith.constant dense<0.000000e+00> : vector<128x8xf32>
    %130 = tpu.matmul %127, %129, %cst_37 {dimension_numbers = #tpu.dot_dimension_numbers<[1], [0], [0], [1], [0, 0, 1, 1], [], []>} : vector<128x8xf32>, vector<8x8xf32>, vector<128x8xf32> -> vector<128x8xf32>
    %131 = arith.addf %125, %130 : vector<128x8xf32>
    %132 = vector.extract_strided_slice %100 {offsets = [1, 2, 0], sizes = [8, 16, 8], strides = [1, 1, 1]} : vector<10x24x8xf32> to vector<8x16x8xf32>
    %133 = vector.shape_cast %132 : vector<8x16x8xf32> to vector<128x8xf32>
    %134 = vector.extract_strided_slice %18 {offsets = [5, 0, 0], sizes = [1, 8, 8], strides = [1, 1, 1]} : vector<9x8x8xf32> to vector<1x8x8xf32>
    %135 = vector.shape_cast %134 : vector<1x8x8xf32> to vector<8x8xf32>
    %cst_38 = arith.constant dense<0.000000e+00> : vector<128x8xf32>
    %136 = tpu.matmul %133, %135, %cst_38 {dimension_numbers = #tpu.dot_dimension_numbers<[1], [0], [0], [1], [0, 0, 1, 1], [], []>} : vector<128x8xf32>, vector<8x8xf32>, vector<128x8xf32> -> vector<128x8xf32>
    %137 = arith.addf %131, %136 : vector<128x8xf32>
    %138 = vector.extract_strided_slice %100 {offsets = [2, 0, 0], sizes = [8, 16, 8], strides = [1, 1, 1]} : vector<10x24x8xf32> to vector<8x16x8xf32>
    %139 = vector.shape_cast %138 : vector<8x16x8xf32> to vector<128x8xf32>
    %140 = vector.extract_strided_slice %18 {offsets = [6, 0, 0], sizes = [1, 8, 8], strides = [1, 1, 1]} : vector<9x8x8xf32> to vector<1x8x8xf32>
    %141 = vector.shape_cast %140 : vector<1x8x8xf32> to vector<8x8xf32>
    %cst_39 = arith.constant dense<0.000000e+00> : vector<128x8xf32>
    %142 = tpu.matmul %139, %141, %cst_39 {dimension_numbers = #tpu.dot_dimension_numbers<[1], [0], [0], [1], [0, 0, 1, 1], [], []>} : vector<128x8xf32>, vector<8x8xf32>, vector<128x8xf32> -> vector<128x8xf32>
    %143 = arith.addf %137, %142 : vector<128x8xf32>
    %144 = vector.extract_strided_slice %100 {offsets = [2, 1, 0], sizes = [8, 16, 8], strides = [1, 1, 1]} : vector<10x24x8xf32> to vector<8x16x8xf32>
    %145 = vector.shape_cast %144 : vector<8x16x8xf32> to vector<128x8xf32>
    %146 = vector.extract_strided_slice %18 {offsets = [7, 0, 0], sizes = [1, 8, 8], strides = [1, 1, 1]} : vector<9x8x8xf32> to vector<1x8x8xf32>
    %147 = vector.shape_cast %146 : vector<1x8x8xf32> to vector<8x8xf32>
    %cst_40 = arith.constant dense<0.000000e+00> : vector<128x8xf32>
    %148 = tpu.matmul %145, %147, %cst_40 {dimension_numbers = #tpu.dot_dimension_numbers<[1], [0], [0], [1], [0, 0, 1, 1], [], []>} : vector<128x8xf32>, vector<8x8xf32>, vector<128x8xf32> -> vector<128x8xf32>
    %149 = arith.addf %143, %148 : vector<128x8xf32>
    %150 = vector.extract_strided_slice %100 {offsets = [2, 2, 0], sizes = [8, 16, 8], strides = [1, 1, 1]} : vector<10x24x8xf32> to vector<8x16x8xf32>
    %151 = vector.shape_cast %150 : vector<8x16x8xf32> to vector<128x8xf32>
    %152 = vector.extract_strided_slice %18 {offsets = [8, 0, 0], sizes = [1, 8, 8], strides = [1, 1, 1]} : vector<9x8x8xf32> to vector<1x8x8xf32>
    %153 = vector.shape_cast %152 : vector<1x8x8xf32> to vector<8x8xf32>
    %cst_41 = arith.constant dense<0.000000e+00> : vector<128x8xf32>
    %154 = tpu.matmul %151, %153, %cst_41 {dimension_numbers = #tpu.dot_dimension_numbers<[1], [0], [0], [1], [0, 0, 1, 1], [], []>} : vector<128x8xf32>, vector<8x8xf32>, vector<128x8xf32> -> vector<128x8xf32>
    %155 = arith.addf %149, %154 : vector<128x8xf32>
    %c0_42 = arith.constant 0 : index
    %c0_43 = arith.constant 0 : index
    %156 = vector.load %arg9[%c0_42, %c0_43] : memref<1x8xf32, #tpu.memory_space<vmem>>, vector<1x8xf32>
    %157 = vector.broadcast %156 : vector<1x8xf32> to vector<128x8xf32>
    %158 = arith.mulf %155, %157 : vector<128x8xf32>
    %c0_44 = arith.constant 0 : index
    %c0_45 = arith.constant 0 : index
    %159 = vector.load %arg10[%c0_44, %c0_45] : memref<1x8xf32, #tpu.memory_space<vmem>>, vector<1x8xf32>
    %160 = vector.broadcast %159 : vector<1x8xf32> to vector<128x8xf32>
    %161 = arith.addf %158, %160 : vector<128x8xf32>
    %162 = vector.shape_cast %161 : vector<128x8xf32> to vector<8x16x8xf32>
    %163 = vector.extract_strided_slice %1 {offsets = [0, 2, 0], sizes = [8, 16, 8], strides = [1, 1, 1]} : vector<8x26x8xf32> to vector<8x16x8xf32>
    %164 = arith.addf %162, %163 : vector<8x16x8xf32>
    %cst_46 = arith.constant 0.000000e+00 : f32
    %165 = vector.broadcast %cst_46 : f32 to vector<8x16x8xf32>
    %166 = arith.maximumf %164, %165 : vector<8x16x8xf32>
    %c0_47 = arith.constant 0 : index
    %c0_48 = arith.constant 0 : index
    %c0_49 = arith.constant 0 : index
    %c0_50 = arith.constant 0 : index
    %167 = vector.load %arg11[%c0_47, %c0_48, %c0_49, %c0_50] : memref<1x8x16x8xf32, #tpu.memory_space<vmem>>, vector<1x8x16x8xf32>
    %168 = vector.shape_cast %167 : vector<1x8x16x8xf32> to vector<8x16x8xf32>
    %169 = vector.shape_cast %166 : vector<8x16x8xf32> to vector<1x8x16x8xf32>
    tpu.vector_store %arg11[%c0_47, %c0_48, %c0_49, %c0_50], %169 {strides = array<i32>} : memref<1x8x16x8xf32, #tpu.memory_space<vmem>>, vector<1x8x16x8xf32>,
    return
  }
  func.func @transform_0(%arg0: i32, %arg1: i32) -> (i32, i32, i32, i32) {
    %c0_i32 = arith.constant 0 : i32
    %c0_i32_0 = arith.constant 0 : i32
    %c0_i32_1 = arith.constant 0 : i32
    return %arg0, %arg1, %c0_i32, %c0_i32_0 : i32, i32, i32, i32
  }
  func.func @transform_1(%arg0: i32, %arg1: i32) -> (i32, i32, i32, i32) {
    %c1_i32 = arith.constant 1 : i32
    %0 = arith.muli %arg1, %c1_i32 : i32
    %c1_i32_0 = arith.constant 1 : i32
    %1 = arith.subi %0, %c1_i32_0 : i32
    %c0_i32 = arith.constant 0 : i32
    %2 = arith.maxsi %1, %c0_i32 : i32
    %c0_i32_1 = arith.constant 0 : i32
    %c0_i32_2 = arith.constant 0 : i32
    %c0_i32_3 = arith.constant 0 : i32
    return %arg0, %2, %c0_i32_1, %c0_i32_2 : i32, i32, i32, i32
  }
  func.func @transform_2(%arg0: i32, %arg1: i32) -> (i32, i32, i32, i32) {
    %c1_i32 = arith.constant 1 : i32
    %0 = arith.addi %arg1, %c1_i32 : i32
    %c1_i32_0 = arith.constant 1 : i32
    %1 = arith.muli %0, %c1_i32_0 : i32
    %c1_i32_1 = arith.constant 1 : i32
    %2 = arith.minsi %1, %c1_i32_1 : i32
    %c0_i32 = arith.constant 0 : i32
    %c0_i32_2 = arith.constant 0 : i32
    %c0_i32_3 = arith.constant 0 : i32
    return %arg0, %2, %c0_i32, %c0_i32_2 : i32, i32, i32, i32
  }
  func.func @transform_3(%arg0: i32, %arg1: i32) -> (i32, i32, i32) {
    %c0_i32 = arith.constant 0 : i32
    %c0_i32_0 = arith.constant 0 : i32
    %c0_i32_1 = arith.constant 0 : i32
    %c0_i32_2 = arith.constant 0 : i32
    return %c0_i32, %c0_i32_0, %c0_i32_1 : i32, i32, i32
  }
  func.func @transform_4(%arg0: i32, %arg1: i32) -> (i32, i32) {
    %c0_i32 = arith.constant 0 : i32
    %c0_i32_0 = arith.constant 0 : i32
    %c0_i32_1 = arith.constant 0 : i32
    return %c0_i32, %c0_i32_0 : i32, i32
  }
  func.func @transform_5(%arg0: i32, %arg1: i32) -> (i32, i32) {
    %c0_i32 = arith.constant 0 : i32
    %c0_i32_0 = arith.constant 0 : i32
    %c0_i32_1 = arith.constant 0 : i32
    return %c0_i32, %c0_i32_0 : i32, i32
  }
  func.func @transform_6(%arg0: i32, %arg1: i32) -> (i32, i32, i32) {
    %c0_i32 = arith.constant 0 : i32
    %c0_i32_0 = arith.constant 0 : i32
    %c0_i32_1 = arith.constant 0 : i32
    %c0_i32_2 = arith.constant 0 : i32
    return %c0_i32, %c0_i32_0, %c0_i32_1 : i32, i32, i32
  }
  func.func @transform_7(%arg0: i32, %arg1: i32) -> (i32, i32) {
    %c0_i32 = arith.constant 0 : i32
    %c0_i32_0 = arith.constant 0 : i32
    %c0_i32_1 = arith.constant 0 : i32
    return %c0_i32, %c0_i32_0 : i32, i32
  }
  func.func @transform_8(%arg0: i32, %arg1: i32) -> (i32, i32) {
    %c0_i32 = arith.constant 0 : i32
    %c0_i32_0 = arith.constant 0 : i32
    %c0_i32_1 = arith.constant 0 : i32
    return %c0_i32, %c0_i32_0 : i32, i32
  }
  func.func @transform_9(%arg0: i32, %arg1: i32) -> (i32, i32, i32, i32) {
    %c0_i32 = arith.constant 0 : i32
    %c0_i32_0 = arith.constant 0 : i32
    %c0_i32_1 = arith.constant 0 : i32
    return %arg0, %arg1, %c0_i32, %c0_i32_0 : i32, i32, i32, i32
  }
}

</mosaic_0001>

<bundles_post_ra>
// kernel: tpu_custom_call.1
= control target key start
LH: loop header
LB: loop body
LE: loop exit
PB: predicated region body
PF: predicated region fallthrough
CT: control target
= control target key end

     0   :  { %s7286_s30 = smov 0   ;;  %s7288_s10 = smov 0   ;;  %s9216_s0 = inlined_call_operand.vmem [shape: f32[2,16,26,8], index: 0, kind: input, shape index: {}]   ;;  %s9217_s1 = inlined_call_operand.vmem [shape: f32[2,16,26,8], index: 1, kind: input, shape index: {}]   ;;  %s9218_s2 = inlined_call_operand.vmem [shape: f32[2,16,26,8], index: 2, kind: input, shape index: {}]   ;;  %s9219_s3 = inlined_call_operand.vmem [shape: f32[9,8,8], index: 3, kind: input, shape index: {}]   ;;  %s9220_s4 = inlined_call_operand.vmem [shape: f32[1,8], index: 4, kind: input, shape index: {}]   ;;  %s9221_s5 = inlined_call_operand.vmem [shape: f32[1,8], index: 5, kind: input, shape index: {}]   ;;  %s9222_s6 = inlined_call_operand.vmem [shape: f32[9,8,8], index: 6, kind: input, shape index: {}]   ;;  %s9223_s7 = inlined_call_operand.vmem [shape: f32[1,8], index: 7, kind: input, shape index: {}]   ;;  %s9224_s8 = inlined_call_operand.vmem [shape: f32[1,8], index: 8, kind: input, shape index: {}]   ;;  %s9225_s9 = inlined_call_operand.vmem [shape: f32[2,16,16,8], index: 9, kind: output, shape index: {}]  }
   0x1   :  { %s7290_s11 = smov 0   ;;  %s7292_s12 = smov 0  }
   0x2   :  { %s7294_s13 = smov 0  }
   0x3 LB: > { %s28_s14 = sadd.s32 1, %s7226_s11  ;;  %s31_s15 = sadd.s32 1, %s7230_s12  ;;  %s7234_s13 = sphi %s7294_s13, %s19_s13   ;;  %s7230_s12 = sphi %s7292_s12, %s9368_s12   ;;  %s7226_s11 = sphi %s7290_s11, %s9367_s11   ;;  %s7222_s10 = sphi %s7288_s10, %s9366_s10   ;;  %s7218_s30 = sphi %s7286_s30, %s9365_s30  }
   0x4   : > { %p29_p0 = scmp.ge.s32.totalorder %s28_s14, 2  ;;  %p5251_p1 = scmp.ge.s32.totalorder %s7234_s13, 1 }
   0x5   : > { %p369_p2 = scmp.lt.s32.totalorder %s7234_s13, 5 }
   0x6   : > { %s9370_s14 = smov (%p29_p0, %s28_s14), 0  ;;  %s9372_s15 = smov (!%p29_p0, %s31_s15), %s7230_s12 }
   0x7   : > { %p370_p3 = pnand %p5251_p1, %p369_p2  ;;  %p33_p4 = scmp.ge.s32.totalorder %s9372_s15, 2 }
   0x9   : > { %s9374_s15 = smov (%p33_p4, %s9372_s15), 0  ;;  %373 = sbr.rel (%p370_p3) target bundleno = 1140 (0x474), region = 56 }
   0xa   : > { %9276 = sst [smem:[#allocation2_spill]] %s9374_s15 }
  0x10   : > { %v7321_v0 = vld [vmem:[%s9219_s3 + $0x10] sm:$0xff]  ;;  %s5252_s18 = sshll.u32 %s7218_s30, 3  ;;  %p442_p5 = scmp.lt.s32.totalorder %s7222_s10, 1  ;;  %v573_v1 = vld [vmem:[%s9219_s3 + $0x18] sm:$0xff]  ;;  %vm699_vm0 = vcmask 64512   ;;  %vm1250_vm1 = vcmask 1045504  }
  0x11   : > { %6223 = vmatprep.subr.mxu0 %v7321_v0  ;;  %p444_p6 = scmp.lt.s32.totalorder %s5252_s18, 15  ;;  %s5256_s21 = sadd.s32 4294967295, %s7218_s30  ;;  %v7391_v31 = vld [vmem:[%s9219_s3 + $0x20] sm:$0xff]  ;;  %vm628_vm2 = vcmask 1046528  }
  0x12   : > { %6224 = vmatpush3.msra.mxu0 %v7321_v0  ;;  %s9378_s10 = smov (!%p442_p5, %s7222_s10), 1  ;;  %p453_p7 = scmp.gt.s32.totalorder %s5256_s21, 0 }
  0x13   : > { %s9376_s18 = smov (!%p444_p6, %s5252_s18), 15  ;;  %6270 = vmatprep.subr.mxu0 %v573_v1  ;;  %s5267_s23 = sshll.u32 %s9378_s10, 5 }
  0x14   : > { %s5266_s22 = sshll.u32 %s9376_s18, 1  ;;  %s9380_s21 = smov (!%p453_p7, %s5256_s21), 0 }
  0x15   : > { %s7330_s24 = sadd.s32 %s5267_s23, %s5266_s22  ;;  %p529_p8 = scmp.gt.s32.totalorder %s7218_s30, 0 }
  0x16   : > { %s7333_s25 = sshll.u32 %s9378_s10, 6  ;;  %s5257_s26 = sshll.u32 %s9380_s21, 3 }
  0x17   : > { %s5253_s27 = sshll.u32 %s9376_s18, 2  ;;  %p458_p9 = scmp.lt.s32.totalorder %s5257_s26, 15 }
  0x18   : > { %s530_s28 = scalar_select %p529_p8, 1, 0 }
  0x19   : > { %s9382_s26 = smov (!%p458_p9, %s5257_s26), 15  ;;  %s448_s17 = sadd.s32 %s7333_s25, %s5253_s27 }
  0x1a   : > { %s531_s29 = scvt.s32.f32 %s530_s28  ;;  %s5258_s16 = sshll.u32 %s9382_s26, 2 }
  0x1b   : > { %s462_s19 = sadd.s32 %s5258_s16, %s7333_s25  ;;  %s5255_s10 = sshll.u32 %s448_s17, 3 }
  0x1c   : > { %s5260_s20 = sshll.u32 %s462_s19, 3  ;;  %v7337_v2 = vstv %s531_s29  ;;  %s7363_s26 = scalar_lea.vmem %s9216_s0, %s5255_s10 }
  0x1d   : > { %9277 = vst [vmem:[#allocation3_spill] sm:$0xff] %v7337_v2  ;;  %s464_s15 = scalar_lea.vmem %s9217_s1, %s5260_s20  ;;  %v7383_v29 = vld [vmem:[%s7363_s26] sm:$0xff]  ;;  %v7386_v30 = vld [vmem:[%s7363_s26 + $0x8] sm:$0xff]  ;;  %v7405_v37 = vld [vmem:[%s7363_s26 + $0x10] sm:$0xff]  ;;  %s469_s16 = sadd.s32 1, %s7218_s30 }
  0x1e   : > { %v5269_v3 = vld [vmem:[%s464_s15 + $0xc0] sm:$0xff]  ;;  %v5270_v4 = vld [vmem:[%s464_s15 + $0xc8] sm:$0xff]  ;;  %v5271_v5 = vld [vmem:[%s464_s15 + $0xd0] sm:$0xff]  ;;  %v1265_v35 = vrot.slane %v7383_v29, 2  ;;  %v1266_v36 = vrot.slane %v7386_v30, 2  ;;  %v1268_v40 = vrot.slane %v7405_v37, 2 }
  0x1f   : > { %v7343_v6 = vmul.f32 %v5269_v3, %v7337_v2  ;;  %v7346_v7 = vmul.f32 %v5270_v4, %v7337_v2  ;;  %v7349_v8 = vmul.f32 %v5271_v5, %v7337_v2  ;;  %v5272_v9 = vld [vmem:[%s464_s15 + $0xd8] sm:$0x3]  ;;  %v5273_v10 = vld [vmem:[%s464_s15 + $0xe0] sm:$0xff]  ;;  %v5274_v11 = vld [vmem:[%s464_s15 + $0xe8] sm:$0xff]  ;;  %p470_p10 = scmp.lt.s32.totalorder %s469_s16, 1  ;;  %p532_p12 = scmp.lt.s32.totalorder %s7218_s30, 1 }
  0x20   : > { %v7352_v12 = vmul.f32 %v5272_v9, %v7337_v2  ;;  %v7355_v13 = vmul.f32 %v5273_v10, %v7337_v2  ;;  %v7358_v14 = vmul.f32 %v5274_v11, %v7337_v2  ;;  %v5275_v15 = vld [vmem:[%s464_s15 + $0xf0] sm:$0xff]  ;;  %v5276_v16 = vld [vmem:[%s464_s15 + $0xf8] sm:$0x3]  ;;  %v7420_v41 = vsel %vm1250_vm1, %v1265_v35, %v1266_v36  ;;  %v7424_v43 = vld [vmem:[%s7363_s26 + $0x20] sm:$0xff] }
  0x21   : > { %v1251_v17 = vrot.slane %v7343_v6, 2  ;;  %v1252_v18 = vrot.slane %v7346_v7, 2  ;;  %v1254_v19 = vrot.slane %v7349_v8, 2  ;;  %v7369_v20 = vmul.f32 %v5275_v15, %v7337_v2  ;;  %v7409_v38 = vld [vmem:[%s7363_s26 + $0x18] sm:$0x3]  ;;  %v7427_v44 = vld [vmem:[%s7363_s26 + $0x28] sm:$0xff] }
  0x22   : > { %v1256_v21 = vrot.slane %v7352_v12, 2  ;;  %v1258_v22 = vrot.slane %v7355_v13, 2  ;;  %v1259_v23 = vrot.slane %v7358_v14, 2  ;;  %v7375_v24 = vmul.f32 %v5276_v16, %v7337_v2  ;;  %v7430_v45 = vld [vmem:[%s7363_s26 + $0x30] sm:$0xff]  ;;  %v7446_v51 = vld [vmem:[%s7363_s26 + $0x38] sm:$0x3] }
  0x23   : > { %v1253_v25 = vsel %vm1250_vm1, %v1251_v17, %v1252_v18  ;;  %v1255_v26 = vsel %vm1250_vm1, %v1252_v18, %v1254_v19  ;;  %v1261_v27 = vrot.slane %v7369_v20, 2  ;;  %v1270_v42 = vrot.slane %v7409_v38, 2  ;;  %v7449_v52 = vld [vmem:[%s7363_s26 + $0x40] sm:$0xff]  ;;  %v7452_v53 = vld [vmem:[%s7363_s26 + $0x48] sm:$0xff]  ;;  %v7468_v59 = vld [vmem:[%s7363_s26 + $0x50] sm:$0xff]  ;;  %s9384_s16 = smov (!%p470_p10, %s469_s16), 1 }
  0x24   : > { %6225 = vmatprep.mubr.msk.f32.mxu0 %vm699_vm0, %v1253_v25  ;;  %v1257_v28 = vsel %vm1250_vm1, %v1254_v19, %v1256_v21  ;;  %v7396_v32 = vsel %vm1250_vm1, %v1258_v22, %v1259_v23  ;;  %v1263_v33 = vrot.slane %v7375_v24, 2  ;;  %v7437_v46 = vsel %vm1250_vm1, %v1266_v36, %v1268_v40  ;;  %v7471_v60 = vld [vmem:[%s7363_s26 + $0x58] sm:$0x3]  ;;  %v7486_v3 = vld [vmem:[%s7363_s26 + $0x60] sm:$0xff]  ;;  %v7489_v4 = vld [vmem:[%s7363_s26 + $0x68] sm:$0xff]  ;;  %s5261_s17 = sshll.u32 %s9384_s16, 3 }
  0x25   : > { %6226 = vmatmul.mubr.msk.f32.vlgmr.msra.gmra.mrb[0].mxu0 %vm699_vm0, %v1255_v26  ;;  %v7400_v34 = vsel %vm1250_vm1, %v1259_v23, %v1261_v27  ;;  %v1272_v47 = vrot.slane %v7424_v43, 2  ;;  %v1273_v48 = vrot.slane %v7427_v44, 2  ;;  %v7442_v49 = vsel %vm1250_vm1, %v1268_v40, %v1270_v42  ;;  %v7492_v5 = vld [vmem:[%s7363_s26 + $0x70] sm:$0xff]  ;;  %v7508_v17 = vld [vmem:[%s7363_s26 + $0x78] sm:$0x3]  ;;  %v7511_v18 = vld [vmem:[%s7363_s26 + $0x80] sm:$0xff] }
  0x26   : > { %6271 = vmatpush3.msra.mxu0 %v573_v1  ;;  %6228 = vmatprep.mubr.msk.f32.mxu0 %vm699_vm0, %v1257_v28  ;;  %v7416_v39 = vsel %vm1250_vm1, %v1261_v27, %v1263_v33  ;;  %v1275_v50 = vrot.slane %v7430_v45, 2  ;;  %v1277_v55 = vrot.slane %v7446_v51, 2  ;;  %v1279_v57 = vrot.slane %v7449_v52, 2  ;;  %v7514_v19 = vld [vmem:[%s7363_s26 + $0x88] sm:$0xff]  ;;  %v7530_v27 = vld [vmem:[%s7363_s26 + $0x90] sm:$0xff]  ;;  %v7548_v42 = vld [vmem:[%s7363_s26 + $0xa0] sm:$0xff] }
  0x27   : > { %6317 = vmatprep.subr.mxu0 %v7391_v31  ;;  %v7459_v54 = vsel %vm1250_vm1, %v1272_v47, %v1273_v48  ;;  %v1280_v58 = vrot.slane %v7452_v53, 2  ;;  %v1282_v62 = vrot.slane %v7468_v59, 2  ;;  %v1284_v1 = vrot.slane %v7471_v60, 2  ;;  %v7533_v28 = vld [vmem:[%s7363_s26 + $0x98] sm:$0x3]  ;;  %v7551_v47 = vld [vmem:[%s7363_s26 + $0xa8] sm:$0xff] }
  0x28   : > { %9278 = vst [vmem:[#allocation4_spill] sm:$0xff] %v7459_v54  ;;  %v7463_v56 = vsel %vm1250_vm1, %v1273_v48, %v1275_v50  ;;  %v7478_v61 = vsel %vm1250_vm1, %v1275_v50, %v1277_v55  ;;  %v1286_v10 = vrot.slane %v7486_v3, 2  ;;  %v1287_v11 = vrot.slane %v7489_v4, 2  ;;  %v7554_v48 = vld [vmem:[%s7363_s26 + $0xb0] sm:$0xff]  ;;  %v7595_v2 = vld [vmem:[%s7363_s26 + $0xd8] sm:$0x3] }
  0x29   : > { %6229 = vmatmul.mubr.msk.f32.gmra.mrb[2].mxu0 %vm699_vm0, %v7396_v32  ;;  %9279 = vst [vmem:[#allocation5_spill] sm:$0xff] %v7463_v56  ;;  %9280 = vst [vmem:[#allocation6_spill] sm:$0xff] %v7478_v61  ;;  %v7482_v63 = vsel %vm1250_vm1, %v1279_v57, %v1280_v58  ;;  %v7499_v9 = vsel %vm1250_vm1, %v1280_v58, %v1282_v62  ;;  %v7504_v15 = vsel %vm1250_vm1, %v1282_v62, %v1284_v1  ;;  %v7570_v1 = vld [vmem:[%s7363_s26 + $0xb8] sm:$0x3]  ;;  %p475_p11 = scmp.lt.s32.totalorder %s5261_s17, 15 }
  0x2a   : > { %6231 = vmatprep.mubr.msk.f32.mxu0 %vm699_vm0, %v7400_v34  ;;  %9281 = vst [vmem:[#allocation7_spill] sm:$0xff] %v7482_v63  ;;  %9282 = vst [vmem:[#allocation8_spill] sm:$0xff] %v7499_v9  ;;  %v1289_v16 = vrot.slane %v7492_v5, 2  ;;  %v7521_v21 = vsel %vm1250_vm1, %v1286_v10, %v1287_v11  ;;  %v1291_v22 = vrot.slane %v7508_v17, 2  ;;  %v1293_v25 = vrot.slane %v7511_v18, 2  ;;  %v7573_v10 = vld [vmem:[%s7363_s26 + $0xc0] sm:$0xff] }
  0x2b   : > { %9283 = vst [vmem:[#allocation9_spill] sm:$0xff] %v7504_v15  ;;  %9284 = vst [vmem:[#allocation10_spill] sm:$0xff] %v7521_v21  ;;  %v1294_v26 = vrot.slane %v7514_v19, 2  ;;  %v1296_v35 = vrot.slane %v7530_v27, 2  ;;  %v1298_v40 = vrot.slane %v7533_v28, 2  ;;  %v1300_v55 = vrot.slane %v7548_v42, 2 }
  0x2c   : > { %v7525_v23 = vsel %vm1250_vm1, %v1287_v11, %v1289_v16  ;;  %v7540_v33 = vsel %vm1250_vm1, %v1289_v16, %v1291_v22  ;;  %v1301_v57 = vrot.slane %v7551_v47, 2  ;;  %v1303_v62 = vrot.slane %v7554_v48, 2  ;;  %v7576_v11 = vld [vmem:[%s7363_s26 + $0xc8] sm:$0xff]  ;;  %s9386_s17 = smov (!%p475_p11, %s5261_s17), 15 }
  0x2d   : > { %6232 = vmatmul.mubr.msk.f32.gmra.mrb[4].mxu0 %vm699_vm0, %v7416_v39  ;;  %9285 = vst [vmem:[#allocation11_spill] sm:$0xff] %v7525_v23  ;;  %9286 = vst [vmem:[#allocation12_spill] sm:$0xff] %v7540_v33  ;;  %v7544_v36 = vsel %vm1250_vm1, %v1293_v25, %v1294_v26  ;;  %v7561_v50 = vsel %vm1250_vm1, %v1294_v26, %v1296_v35  ;;  %v7566_v58 = vsel %vm1250_vm1, %v1296_v35, %v1298_v40  ;;  %v7592_v40 = vld [vmem:[%s7363_s26 + $0xd0] sm:$0xff]  ;;  %s5262_s19 = sshll.u32 %s9386_s17, 2 }
  0x2e   : > { %6234 = vmatprep.mubr.msk.f32.mxu0 %vm699_vm0, %v7420_v41  ;;  %9287 = vst [vmem:[#allocation13_spill] sm:$0xff] %v7544_v36  ;;  %9288 = vst [vmem:[#allocation14_spill] sm:$0xff] %v7561_v50  ;;  %v7583_v16 = vsel %vm1250_vm1, %v1300_v55, %v1301_v57  ;;  %v1305_v22 = vrot.slane %v7570_v1, 2  ;;  %v7587_v25 = vsel %vm1250_vm1, %v1301_v57, %v1303_v62  ;;  %v1307_v26 = vrot.slane %v7573_v10, 2  ;;  %s479_s20 = sadd.s32 %s5262_s19, %s7333_s25 }
  0x2f   : > { %9289 = vst [vmem:[#allocation15_spill] sm:$0xff] %v7566_v58  ;;  %9290 = vst [vmem:[#allocation16_spill] sm:$0xff] %v7583_v16  ;;  %v1308_v35 = vrot.slane %v7576_v11, 2  ;;  %v1310_v57 = vrot.slane %v7592_v40, 2  ;;  %s533_s22 = scalar_select %p532_p12, 1, 0 }
  0x30   : > { %9291 = vst [vmem:[#allocation17_spill] sm:$0xff] %v7587_v25  ;;  %v7602_v55 = vsel %vm1250_vm1, %v1303_v62, %v1305_v22  ;;  %s5264_s23 = sshll.u32 %s479_s20, 3 }
  0x31   : > { %6235 = vmatmul.mubr.msk.f32.gmra.mrb[6].mxu0 %vm699_vm0, %v7437_v46  ;;  %9292 = vst [vmem:[#allocation18_spill] sm:$0xff] %v7602_v55  ;;  %v7620_v62 = vsel %vm1250_vm1, %v1308_v35, %v1310_v57  ;;  %s534_s30 = scvt.s32.f32 %s533_s22  ;;  %s7704_s15 = scalar_lea.vmem %s9218_s2, %s5264_s23 }
  0x32   : > { %6237 = vmatprep.mubr.msk.f32.mxu0 %vm699_vm0, %v7442_v49  ;;  %9294 = vst [vmem:[#allocation20_spill] sm:$0xff] %v7620_v62 }
  0x35   : > { %6238 = vmatmul.mubr.msk.f32.gmra.mrb[8].mxu0 %vm699_vm0, %v7459_v54 }
  0x36   : > { %6240 = vmatprep.mubr.msk.f32.mxu0 %vm699_vm0, %v7463_v56  ;;  %v7788_v56 = vld [vmem:[%s9219_s3 + $0x30] sm:$0xff] }
  0x39   : > { %6241 = vmatmul.mubr.msk.f32.gmra.mrb[10].mxu0 %vm699_vm0, %v7478_v61  ;;  %v658_v61 = vrot.slane %v7452_v53, 1 }
  0x3a   : > { %6243 = vmatprep.mubr.msk.f32.mxu0 %vm699_vm0, %v7482_v63  ;;  %v648_v63 = vrot.slane %v7409_v38, 1  ;;  %v651_v38 = vrot.slane %v7427_v44, 1 }
  0x3d   : > { %6244 = vmatmul.mubr.msk.f32.gmra.mrb[12].mxu0 %vm699_vm0, %v7499_v9  ;;  %v644_v9 = vrot.slane %v7386_v30, 1 }
  0x3e   : > { %6246 = vmatprep.mubr.msk.f32.mxu0 %vm699_vm0, %v7504_v15  ;;  %v643_v15 = vrot.slane %v7383_v29, 1 }
  0x41   : > { %6247 = vmatmul.mubr.msk.f32.gmra.mrb[14].mxu0 %vm699_vm0, %v7521_v21 }
  0x42   : > { %6249 = vmatprep.mubr.msk.f32.mxu0 %vm699_vm0, %v7525_v23  ;;  %v7718_v23 = vstv %s534_s30 }
  0x45   : > { %6250 = vmatmul.mubr.msk.f32.gmra.mrb[16].mxu0 %vm699_vm0, %v7540_v33  ;;  %v7613_v33 = vld [vmem:[%s7363_s26 + $0xe8] sm:$0xff] }
  0x46   : > { %6252 = vmatprep.mubr.msk.f32.mxu0 %vm699_vm0, %v7544_v36  ;;  %v7610_v36 = vld [vmem:[%s7363_s26 + $0xe0] sm:$0xff] }
  0x47   : > { %v1314_v22 = vrot.slane %v7610_v36, 2 }
  0x49   : > { %6253 = vmatmul.mubr.msk.f32.gmra.mrb[18].mxu0 %vm699_vm0, %v7561_v50  ;;  %v1312_v50 = vrot.slane %v7595_v2, 2 }
  0x4a   : > { %6255 = vmatprep.mubr.msk.f32.mxu0 %vm699_vm0, %v7566_v58  ;;  %v7606_v58 = vsel %vm1250_vm1, %v1307_v26, %v1308_v35  ;;  %v9240_v26 = vrot.slane %v7613_v33, 2  ;;  %v630_v35 = vrot.slane %v7346_v7, 1 }
  0x4b   : > { %9293 = vst [vmem:[#allocation19_spill] sm:$0xff] %v7606_v58 }
  0x4d   : > { %6256 = vmatmul.mubr.msk.f32.gmra.mrb[20].mxu0 %vm699_vm0, %v7583_v16  ;;  %v553_v16 = vld [vmem:[%s7704_s15] sm:$0xff] }
  0x4e   : > { %6258 = vmatprep.mubr.msk.f32.mxu0 %vm699_vm0, %v7587_v25  ;;  %v7625_v25 = vsel %vm1250_vm1, %v1310_v57, %v1312_v50  ;;  %v7643_v50 = vld [vmem:[%s9219_s3 + $0x28] sm:$0xff] }
  0x4f   : > { %9295 = vst [vmem:[#allocation21_spill] sm:$0xff] %v7625_v25  ;;  %v571_v57 = vld [vmem:[%s9219_s3 + $0x8] sm:$0xff] }
  0x50   : > { %6129 = vmatprep.subr.mxu1 %v571_v57 }
  0x51   : > { %6259 = vmatmul.mubr.msk.f32.gmra.mrb[22].mxu0 %vm699_vm0, %v7602_v55  ;;  %6130 = vmatpush3.msra.mxu1 %v571_v57  ;;  %v639_v55 = vrot.slane %v7369_v20, 1  ;;  %v7722_v57 = vld [vmem:[%s7363_s26 + $0xf0] sm:$0xff] }
  0x52   : > { %6261 = vmatprep.mubr.msk.f32.mxu0 %vm699_vm0, %v7606_v58  ;;  %v7634_v58 = vsel %vm1250_vm1, %v1314_v22, %v9240_v26  ;;  %v632_v22 = vrot.slane %v7349_v8, 1 }
  0x53   : > { %9296 = vst [vmem:[#allocation22_spill] sm:$0xff] %v7634_v58 }
  0x55   : > { %6262 = vmatmul.mubr.msk.f32.gmra.mrb[24].mxu0 %vm699_vm0, %v7620_v62  ;;  %v633_v62 = vsel %vm628_vm2, %v630_v35, %v632_v22 }
  0x56   : > { %6264 = vmatprep.mubr.msk.f32.mxu0 %vm699_vm0, %v7625_v25  ;;  %v637_v25 = vrot.slane %v7358_v14, 1 }
  0x59   : > { %6265 = vmatmul.mubr.msk.f32.gmra.mrb[26].mxu0 %vm699_vm0, %v7634_v58  ;;  %v636_v58 = vrot.slane %v7355_v13, 1 }
  0x5a   : > { %6272 = vmatprep.mubr.msk.f32.mxu0 %vm699_vm0, %v7355_v13 }
  0x5b   : > { %v638_v21 = vsel %vm628_vm2, %v636_v58, %v637_v25  ;;  %v555_v58 = vld [vmem:[%s7704_s15 + $0x10] sm:$0xff] }
  0x5d   : > { %6273 = vmatmul.mubr.msk.f32.vlgmr.msra.gmra.mrb[0].mxu0 %vm699_vm0, %v7358_v14 }
  0x5e   : > { %6318 = vmatpush3.msra.mxu0 %v7391_v31  ;;  %6275 = vmatprep.mubr.msk.f32.mxu0 %vm699_vm0, %v7369_v20  ;;  %v629_v31 = vrot.slane %v7343_v6, 1 }
  0x5f   : > { %6364 = vmatprep.subr.mxu0 %v7643_v50 }
  0x60   : > { %v631_v26 = vsel %vm628_vm2, %v629_v31, %v630_v35  ;;  %v634_v31 = vrot.slane %v7352_v12, 1  ;;  %v554_v35 = vld [vmem:[%s7704_s15 + $0x8] sm:$0xff]  ;;  %v640_v12 = vsel %vm628_vm2, %v637_v25, %v639_v55 }
  0x61   : > { %6276 = vmatmul.mubr.msk.f32.gmra.mrb[2].mxu0 %vm699_vm0, %v7383_v29  ;;  %6131 = vmatprep.mubr.msk.f32.mxu1 %vm699_vm0, %v631_v26 }
  0x62   : > { %6278 = vmatprep.mubr.msk.f32.mxu0 %vm699_vm0, %v7386_v30  ;;  %6132 = vmatmul.mubr.msk.f32.vlgmr.msra.gmra.mrb[0].mxu1 %vm699_vm0, %v633_v62  ;;  %v635_v26 = vsel %vm628_vm2, %v632_v22, %v634_v31  ;;  %v641_v62 = vrot.slane %v7375_v24, 1  ;;  %v7735_v22 = vmul.f32 %v7718_v23, %v553_v16  ;;  %v7741_v24 = vmul.f32 %v7718_v23, %v554_v35 }
  0x63   : > { %6134 = vmatprep.mubr.msk.f32.mxu1 %vm699_vm0, %v635_v26  ;;  %v646_v31 = vrot.slane %v7405_v37, 1  ;;  %v7747_v26 = vsel %vm628_vm2, %v643_v15, %v644_v9  ;;  %v7754_v16 = vmul.f32 %v7718_v23, %v555_v58  ;;  %v650_v15 = vrot.slane %v7424_v43, 1 }
  0x64   : > { %v642_v25 = vsel %vm628_vm2, %v639_v55, %v641_v62  ;;  %v653_v62 = vrot.slane %v7430_v45, 1  ;;  %v655_v58 = vrot.slane %v7446_v51, 1 }
  0x65   : > { %6279 = vmatmul.mubr.msk.f32.gmra.mrb[4].mxu0 %vm699_vm0, %v7405_v37  ;;  %v7761_v55 = vsel %vm628_vm2, %v644_v9, %v646_v31  ;;  %v7766_v35 = vsel %vm628_vm2, %v646_v31, %v648_v63  ;;  %v7777_v9 = vsel %vm628_vm2, %v650_v15, %v651_v38  ;;  %v657_v31 = vrot.slane %v7449_v52, 1 }
  0x66   : > { %6281 = vmatprep.mubr.msk.f32.mxu0 %vm699_vm0, %v7424_v43  ;;  %6135 = vmatmul.mubr.msk.f32.gmra.mrb[2].mxu1 %vm699_vm0, %v638_v21  ;;  %9297 = vst [vmem:[#allocation23_spill] sm:$0xff] %v7777_v9  ;;  %v7781_v63 = vsel %vm628_vm2, %v651_v38, %v653_v62  ;;  %v7798_v51 = vsel %vm628_vm2, %v653_v62, %v655_v58  ;;  %v662_v38 = vrot.slane %v7471_v60, 1  ;;  %v667_v62 = vrot.slane %v7492_v5, 1 }
  0x67   : > { %6137 = vmatprep.mubr.msk.f32.mxu1 %vm699_vm0, %v640_v12  ;;  %9298 = vst [vmem:[#allocation24_spill] sm:$0xff] %v7798_v51  ;;  %v7803_v15 = vsel %vm628_vm2, %v657_v31, %v658_v61  ;;  %v669_v58 = vrot.slane %v7508_v17, 1 }
  0x68   : > { %9299 = vst [vmem:[#allocation25_spill] sm:$0xff] %v7803_v15 }
  0x69   : > { %6282 = vmatmul.mubr.msk.f32.gmra.mrb[6].mxu0 %vm699_vm0, %v7427_v44  ;;  %v7849_v17 = vsel %vm628_vm2, %v667_v62, %v669_v58  ;;  %v678_v58 = vrot.slane %v7548_v42, 1 }
  0x6a   : > { %6284 = vmatprep.mubr.msk.f32.mxu0 %vm699_vm0, %v7430_v45  ;;  %6138 = vmatmul.mubr.msk.f32.gmra.mrb[4].mxu1 %vm699_vm0, %v642_v25  ;;  %9303 = vst [vmem:[#allocation29_spill] sm:$0xff] %v7849_v17 }
  0x6b   : > { %6140 = vmatprep.mubr.msk.f32.mxu1 %vm699_vm0, %v7747_v26 }
  0x6d   : > { %6285 = vmatmul.mubr.msk.f32.gmra.mrb[8].mxu0 %vm699_vm0, %v7449_v52 }
  0x6e   : > { %6287 = vmatprep.mubr.msk.f32.mxu0 %vm699_vm0, %v7452_v53  ;;  %6141 = vmatmul.mubr.msk.f32.gmra.mrb[6].mxu1 %vm699_vm0, %v7761_v55 }
  0x6f   : > { %6143 = vmatprep.mubr.msk.f32.mxu1 %vm699_vm0, %v7766_v35 }
  0x71   : > { %6288 = vmatmul.mubr.msk.f32.gmra.mrb[10].mxu0 %vm699_vm0, %v7468_v59 }
  0x72   : > { %6290 = vmatprep.mubr.msk.f32.mxu0 %vm699_vm0, %v7486_v3  ;;  %6144 = vmatmul.mubr.msk.f32.gmra.mrb[8].mxu1 %vm699_vm0, %v7777_v9 }
  0x73   : > { %6146 = vmatprep.mubr.msk.f32.mxu1 %vm699_vm0, %v7781_v63 }
  0x75   : > { %6291 = vmatmul.mubr.msk.f32.gmra.mrb[12].mxu0 %vm699_vm0, %v7489_v4 }
  0x76   : > { %6293 = vmatprep.mubr.msk.f32.mxu0 %vm699_vm0, %v7492_v5  ;;  %6147 = vmatmul.mubr.msk.f32.gmra.mrb[10].mxu1 %vm699_vm0, %v7798_v51 }
  0x77   : > { %6149 = vmatprep.mubr.msk.f32.mxu1 %vm699_vm0, %v7803_v15 }
  0x79   : > { %6294 = vmatmul.mubr.msk.f32.gmra.mrb[14].mxu0 %vm699_vm0, %v7511_v18 }
  0x7a   : > { %6296 = vmatprep.mubr.msk.f32.mxu0 %vm699_vm0, %v7514_v19 }
  0x7d   : > { %6297 = vmatmul.mubr.msk.f32.gmra.mrb[16].mxu0 %vm699_vm0, %v7530_v27 }
  0x7e   : > { %6299 = vmatprep.mubr.msk.f32.mxu0 %vm699_vm0, %v7548_v42 }
  0x81   : > { %6300 = vmatmul.mubr.msk.f32.gmra.mrb[18].mxu0 %vm699_vm0, %v7551_v47 }
  0x82   : > { %6302 = vmatprep.mubr.msk.f32.mxu0 %vm699_vm0, %v7554_v48 }
  0x85   : > { %6303 = vmatmul.mubr.msk.f32.gmra.mrb[20].mxu0 %vm699_vm0, %v7573_v10 }
  0x86   : > { %6305 = vmatprep.mubr.msk.f32.mxu0 %vm699_vm0, %v7576_v11 }
  0x89   : > { %6306 = vmatmul.mubr.msk.f32.gmra.mrb[22].mxu0 %vm699_vm0, %v7592_v40 }
  0x8a   : > { %6308 = vmatprep.mubr.msk.f32.mxu0 %vm699_vm0, %v7610_v36 }
  0x8d   : > { %6309 = vmatmul.mubr.msk.f32.gmra.mrb[24].mxu0 %vm699_vm0, %v7613_v33 }
  0x8e   : > { %6311 = vmatprep.mubr.msk.f32.mxu0 %vm699_vm0, %v7722_v57 }
  0x91   : > { %6312 = vmatmul.mubr.msk.f32.gmra.mrb[26].mxu0 %vm699_vm0, %v7735_v22 }
  0x92   : > { %6314 = vmatprep.mubr.msk.f32.mxu0 %vm699_vm0, %v7741_v24 }
  0x95   : > { %6315 = vmatmul.mubr.msk.f32.gmra.mrb[28].mxu0 %vm699_vm0, %v7754_v16 }
  0x96   : > { %6319 = vmatprep.mubr.msk.f32.mxu0 %vm699_vm0, %v638_v21  ;;  %v660_v21 = vrot.slane %v7468_v59, 1 }
  0x98   : > { %v7820_v60 = vsel %vm628_vm2, %v660_v21, %v662_v38  ;;  %v672_v38 = vrot.slane %v7514_v19, 1 }
  0x99   : > { %6320 = vmatmul.mubr.msk.f32.vlgmr.msra.gmra.mrb[0].mxu0 %vm699_vm0, %v640_v12  ;;  %v664_v12 = vrot.slane %v7486_v3, 1 }
  0x9a   : > { %6365 = vmatpush3.msra.mxu0 %v7643_v50  ;;  %6322 = vmatprep.mubr.msk.f32.mxu0 %vm699_vm0, %v642_v25  ;;  %v7815_v50 = vsel %vm628_vm2, %v658_v61, %v660_v21  ;;  %v665_v25 = vrot.slane %v7489_v4, 1  ;;  %v671_v21 = vrot.slane %v7511_v18, 1 }
  0x9b   : > { %6411 = vmatprep.subr.mxu0 %v7788_v56  ;;  %9300 = vst [vmem:[#allocation26_spill] sm:$0xff] %v7815_v50  ;;  %6150 = vmatmul.mubr.msk.f32.gmra.mrb[12].mxu1 %vm699_vm0, %v7815_v50 }
  0x9c   : > { %6152 = vmatprep.mubr.msk.f32.mxu1 %vm699_vm0, %v7820_v60  ;;  %v7832_v61 = vsel %vm628_vm2, %v664_v12, %v665_v25  ;;  %v7836_v31 = vsel %vm628_vm2, %v665_v25, %v667_v62  ;;  %v674_v12 = vrot.slane %v7530_v27, 1  ;;  %v7853_v25 = vsel %vm628_vm2, %v671_v21, %v672_v38 }
  0x9d   : > { %6323 = vmatmul.mubr.msk.f32.gmra.mrb[2].mxu0 %vm699_vm0, %v7747_v26  ;;  %9301 = vst [vmem:[#allocation27_spill] sm:$0xff] %v7832_v61  ;;  %9302 = vst [vmem:[#allocation28_spill] sm:$0xff] %v7836_v31  ;;  %v679_v21 = vrot.slane %v7551_v47, 1 }
  0x9e   : > { %6325 = vmatprep.mubr.msk.f32.mxu0 %vm699_vm0, %v7761_v55  ;;  %v7865_v62 = vsel %vm628_vm2, %v672_v38, %v674_v12 }
  0x9f   : > { %6153 = vmatmul.mubr.msk.f32.gmra.mrb[14].mxu1 %vm699_vm0, %v7832_v61  ;;  %v7882_v38 = vsel %vm628_vm2, %v678_v58, %v679_v21  ;;  %v688_v58 = vrot.slane %v7592_v40, 1 }
  0xa0   : > { %6155 = vmatprep.mubr.msk.f32.mxu1 %vm699_vm0, %v7836_v31 }
  0xa1   : > { %6326 = vmatmul.mubr.msk.f32.gmra.mrb[4].mxu0 %vm699_vm0, %v7766_v35 }
  0xa2   : > { %6328 = vmatprep.mubr.msk.f32.mxu0 %vm699_vm0, %v7777_v9  ;;  %v676_v9 = vrot.slane %v7533_v28, 1 }
  0xa3   : > { %6156 = vmatmul.mubr.msk.f32.gmra.mrb[16].mxu1 %vm699_vm0, %v7849_v17 }
  0xa4   : > { %6158 = vmatprep.mubr.msk.f32.mxu1 %vm699_vm0, %v7853_v25  ;;  %v7870_v28 = vsel %vm628_vm2, %v674_v12, %v676_v9  ;;  %v683_v9 = vrot.slane %v7570_v1, 1 }
  0xa5   : > { %6329 = vmatmul.mubr.msk.f32.gmra.mrb[6].mxu0 %vm699_vm0, %v7781_v63 }
  0xa6   : > { %6331 = vmatprep.mubr.msk.f32.mxu0 %vm699_vm0, %v7798_v51  ;;  %v681_v51 = vrot.slane %v7554_v48, 1 }
  0xa7   : > { %6159 = vmatmul.mubr.msk.f32.gmra.mrb[18].mxu1 %vm699_vm0, %v7865_v62 }
  0xa8   : > { %6161 = vmatprep.mubr.msk.f32.mxu1 %vm699_vm0, %v7870_v28  ;;  %v7886_v12 = vsel %vm628_vm2, %v679_v21, %v681_v51  ;;  %v7899_v1 = vsel %vm628_vm2, %v681_v51, %v683_v9  ;;  %v693_v9 = vrot.slane %v7613_v33, 1 }
  0xa9   : > { %6332 = vmatmul.mubr.msk.f32.gmra.mrb[8].mxu0 %vm699_vm0, %v7803_v15  ;;  %v686_v15 = vrot.slane %v7576_v11, 1  ;;  %9304 = vst [vmem:[#allocation30_spill] sm:$0xff] %v7899_v1 }
  0xaa   : > { %6334 = vmatprep.mubr.msk.f32.mxu0 %vm699_vm0, %v7815_v50  ;;  %v685_v50 = vrot.slane %v7573_v10, 1 }
  0xab   : > { %6162 = vmatmul.mubr.msk.f32.gmra.mrb[20].mxu1 %vm699_vm0, %v7882_v38  ;;  %v7915_v51 = vsel %vm628_vm2, %v686_v15, %v688_v58 }
  0xac   : > { %6164 = vmatprep.mubr.msk.f32.mxu1 %vm699_vm0, %v7886_v12  ;;  %v7903_v21 = vsel %vm628_vm2, %v685_v50, %v686_v15  ;;  %v692_v50 = vrot.slane %v7610_v36, 1 }
  0xad   : > { %6335 = vmatmul.mubr.msk.f32.gmra.mrb[10].mxu0 %vm699_vm0, %v7820_v60 }
  0xae   : > { %6337 = vmatprep.mubr.msk.f32.mxu0 %vm699_vm0, %v7832_v61  ;;  %v690_v61 = vrot.slane %v7595_v2, 1  ;;  %v7935_v15 = vsel %vm628_vm2, %v692_v50, %v693_v9 }
  0xaf   : > { %6165 = vmatmul.mubr.msk.f32.gmra.mrb[22].mxu1 %vm699_vm0, %v7899_v1 }
  0xb0   : > { %6167 = vmatprep.mubr.msk.f32.mxu1 %vm699_vm0, %v7903_v21  ;;  %v7920_v2 = vsel %vm628_vm2, %v688_v58, %v690_v61 }
  0xb1   : > { %6338 = vmatmul.mubr.msk.f32.gmra.mrb[12].mxu0 %vm699_vm0, %v7836_v31  ;;  %v7924_v31 = vld [vmem:[%s7363_s26 + $0xf8] sm:$0x3]  ;;  %s5268_s26 = sshll.u32 %s7330_s24, 3 }
  0xb2   : > { %6340 = vmatprep.mubr.msk.f32.mxu0 %vm699_vm0, %v7849_v17  ;;  %v695_v17 = vrot.slane %v7722_v57, 1  ;;  %v697_v61 = vrot.slane %v7924_v31, 1  ;;  %s9125_s17 = scalar_lea.vmem %s9225_s9, %s5268_s26 }
  0xb3   : > { %6168 = vmatmul.mubr.msk.f32.gmra.mrb[24].mxu1 %vm699_vm0, %v7915_v51 }
  0xb4   : > { %6170 = vmatprep.mubr.msk.f32.mxu1 %vm699_vm0, %v7920_v2  ;;  %v7939_v58 = vsel %vm628_vm2, %v693_v9, %v695_v17  ;;  %v7950_v50 = vsel %vm628_vm2, %v695_v17, %v697_v61  ;;  %v570_v9 = vld [vmem:[%s9219_s3] sm:$0xff]  ;;  %v1882_v17 = vrot.slane %v7741_v24, 1 }
  0xb5   : > { %6341 = vmatmul.mubr.msk.f32.gmra.mrb[14].mxu0 %vm699_vm0, %v7853_v25  ;;  %6176 = vmatprep.subr.mxu1 %v570_v9 }
  0xb6   : > { %6343 = vmatprep.mubr.msk.f32.mxu0 %vm699_vm0, %v7865_v62  ;;  %6177 = vmatpush3.msra.mxu1 %v570_v9  ;;  %v9310_v9 = vld [vmem:[#allocation10_spill] sm:$0xff] }
  0xb7   : > { %6171 = vmatmul.mubr.msk.f32.gmra.mrb[26].mxu1 %vm699_vm0, %v7935_v15  ;;  %6786 = vmatprep.subr.mxu1 %v7321_v0 }
  0xb8   : > { %6173 = vmatprep.mubr.msk.f32.mxu1 %vm699_vm0, %v7939_v58 }
  0xb9   : > { %6344 = vmatmul.mubr.msk.f32.gmra.mrb[16].mxu0 %vm699_vm0, %v7870_v28 }
  0xba   : > { %6346 = vmatprep.mubr.msk.f32.mxu0 %vm699_vm0, %v7882_v38 }
  0xbb   : > { %6174 = vmatmul.mubr.msk.f32.gmra.mrb[28].mxu1 %vm699_vm0, %v7950_v50 }
  0xbc   : > { %6178 = vmatprep.mubr.msk.f32.mxu1 %vm699_vm0, %v7343_v6  ;;  %v1881_v6 = vrot.slane %v7735_v22, 1 }
  0xbd   : > { %6347 = vmatmul.mubr.msk.f32.gmra.mrb[18].mxu0 %vm699_vm0, %v7886_v12 }
  0xbe   : > { %6349 = vmatprep.mubr.msk.f32.mxu0 %vm699_vm0, %v7899_v1  ;;  %v556_v1 = vld [vmem:[%s7704_s15 + $0x18] sm:$0x3] }
  0xbf   : > { %6179 = vmatmul.mubr.msk.f32.vlgmr.msra.gmra.mrb[0].mxu1 %vm699_vm0, %v7346_v7  ;;  %v7976_v61 = vmul.f32 %v7718_v23, %v556_v1  ;;  %v1884_v7 = vrot.slane %v7754_v16, 1 }
  0xc0   : > { %6181 = vmatprep.mubr.msk.f32.mxu1 %vm699_vm0, %v7349_v8  ;;  %6787 = vmatpush3.msra.mxu1 %v7321_v0  ;;  %v7989_v8 = vsel %vm628_vm2, %v1881_v6, %v1882_v17  ;;  %v9311_v6 = vld [vmem:[#allocation11_spill] sm:$0xff] }
  0xc1   : > { %6350 = vmatmul.mubr.msk.f32.gmra.mrb[20].mxu0 %vm699_vm0, %v7903_v21  ;;  %v1886_v1 = vrot.slane %v7976_v61, 1  ;;  %v7993_v0 = vsel %vm628_vm2, %v1882_v17, %v1884_v7  ;;  %v9312_v17 = vld [vmem:[#allocation12_spill] sm:$0xff] }
  0xc2   : > { %6352 = vmatprep.mubr.msk.f32.mxu0 %vm699_vm0, %v7915_v51 }
  0xc3   : > { %6182 = vmatmul.mubr.msk.f32.gmra.mrb[2].mxu1 %vm699_vm0, %v7355_v13  ;;  %v8004_v13 = vsel %vm628_vm2, %v1884_v7, %v1886_v1  ;;  %v9313_v7 = vld [vmem:[#allocation13_spill] sm:$0xff]  ;;  %v9314_v1 = vld [vmem:[#allocation14_spill] sm:$0xff] }
  0xc4   : > { %6184 = vmatprep.mubr.msk.f32.mxu1 %vm699_vm0, %v7358_v14  ;;  %v8017_v14 = vld [vmem:[%s9219_s3 + $0x38] sm:$0xff] }
  0xc5   : > { %6353 = vmatmul.mubr.msk.f32.gmra.mrb[22].mxu0 %vm699_vm0, %v7920_v2 }
  0xc6   : > { %6355 = vmatprep.mubr.msk.f32.mxu0 %vm699_vm0, %v7935_v15 }
  0xc7   : > { %6185 = vmatmul.mubr.msk.f32.gmra.mrb[4].mxu1 %vm699_vm0, %v7369_v20  ;;  %v9305_v20 = vld [vmem:[#allocation5_spill] sm:$0xff] }
  0xc8   : > { %6187 = vmatprep.mubr.msk.f32.mxu1 %vm699_vm0, %v7383_v29 }
  0xc9   : > { %6356 = vmatmul.mubr.msk.f32.gmra.mrb[24].mxu0 %vm699_vm0, %v7939_v58 }
  0xca   : > { %6358 = vmatprep.mubr.msk.f32.mxu0 %vm699_vm0, %v7950_v50 }
  0xcb   : > { %6188 = vmatmul.mubr.msk.f32.gmra.mrb[6].mxu1 %vm699_vm0, %v7386_v30 }
  0xcc   : > { %6190 = vmatprep.mubr.msk.f32.mxu1 %vm699_vm0, %v7405_v37 }
  0xcd   : > { %6359 = vmatmul.mubr.msk.f32.gmra.mrb[26].mxu0 %vm699_vm0, %v7989_v8 }
  0xce   : > { %6361 = vmatprep.mubr.msk.f32.mxu0 %vm699_vm0, %v7993_v0 }
  0xcf   : > { %6191 = vmatmul.mubr.msk.f32.gmra.mrb[8].mxu1 %vm699_vm0, %v7424_v43 }
  0xd0   : > { %6193 = vmatprep.mubr.msk.f32.mxu1 %vm699_vm0, %v7427_v44 }
  0xd1   : > { %6362 = vmatmul.mubr.msk.f32.gmra.mrb[28].mxu0 %vm699_vm0, %v8004_v13 }
  0xd2   : > { %6366 = vmatprep.mubr.msk.f32.mxu0 %vm699_vm0, %v7396_v32  ;;  %v9306_v32 = vld [vmem:[#allocation6_spill] sm:$0xff] }
  0xd3   : > { %6194 = vmatmul.mubr.msk.f32.gmra.mrb[10].mxu1 %vm699_vm0, %v7430_v45 }
  0xd4   : > { %6196 = vmatprep.mubr.msk.f32.mxu1 %vm699_vm0, %v7449_v52 }
  0xd5   : > { %6367 = vmatmul.mubr.msk.f32.vlgmr.msra.gmra.mrb[0].mxu0 %vm699_vm0, %v7400_v34  ;;  %v9307_v34 = vld [vmem:[#allocation7_spill] sm:$0xff] }
  0xd6   : > { %6412 = vmatpush3.msra.mxu0 %v7788_v56  ;;  %6369 = vmatprep.mubr.msk.f32.mxu0 %vm699_vm0, %v7416_v39  ;;  %v9308_v39 = vld [vmem:[#allocation8_spill] sm:$0xff]  ;;  %v9309_v56 = vld [vmem:[#allocation9_spill] sm:$0xff] }
  0xd7   : > { %6458 = vmatprep.subr.mxu0 %v8017_v14  ;;  %6197 = vmatmul.mubr.msk.f32.gmra.mrb[12].mxu1 %vm699_vm0, %v7452_v53 }
  0xd8   : > { %6199 = vmatprep.mubr.msk.f32.mxu1 %vm699_vm0, %v7468_v59 }
  0xd9   : > { %6370 = vmatmul.mubr.msk.f32.gmra.mrb[2].mxu0 %vm699_vm0, %v7420_v41 }
  0xda   : > { %6372 = vmatprep.mubr.msk.f32.mxu0 %vm699_vm0, %v7437_v46 }
  0xdb   : > { %6200 = vmatmul.mubr.msk.f32.gmra.mrb[14].mxu1 %vm699_vm0, %v7486_v3 }
  0xdc   : > { %6202 = vmatprep.mubr.msk.f32.mxu1 %vm699_vm0, %v7489_v4 }
  0xdd   : > { %6373 = vmatmul.mubr.msk.f32.gmra.mrb[4].mxu0 %vm699_vm0, %v7442_v49 }
  0xde   : > { %6375 = vmatprep.mubr.msk.f32.mxu0 %vm699_vm0, %v7459_v54 }
  0xdf   : > { %6203 = vmatmul.mubr.msk.f32.gmra.mrb[16].mxu1 %vm699_vm0, %v7492_v5 }
  0xe0   : > { %6205 = vmatprep.mubr.msk.f32.mxu1 %vm699_vm0, %v7511_v18 }
  0xe1   : > { %6376 = vmatmul.mubr.msk.f32.gmra.mrb[6].mxu0 %vm699_vm0, %v9305_v20  ;;  %v2142_v20 = vrot.slane %v7754_v16, 2 }
  0xe2   : > { %6378 = vmatprep.mubr.msk.f32.mxu0 %vm699_vm0, %v9306_v32  ;;  %v2140_v32 = vrot.slane %v7741_v24, 2 }
  0xe3   : > { %6206 = vmatmul.mubr.msk.f32.gmra.mrb[18].mxu1 %vm699_vm0, %v7514_v19 }
  0xe4   : > { %6208 = vmatprep.mubr.msk.f32.mxu1 %vm699_vm0, %v7530_v27 }
  0xe5   : > { %6379 = vmatmul.mubr.msk.f32.gmra.mrb[8].mxu0 %vm699_vm0, %v9307_v34  ;;  %v9324_v34 = vld [vmem:[#allocation22_spill] sm:$0xff] }
  0xe6   : > { %6381 = vmatprep.mubr.msk.f32.mxu0 %vm699_vm0, %v9308_v39  ;;  %v1319_v39 = vrot.slane %v7924_v31, 2 }
  0xe7   : > { %6209 = vmatmul.mubr.msk.f32.gmra.mrb[20].mxu1 %vm699_vm0, %v7548_v42 }
  0xe8   : > { %6211 = vmatprep.mubr.msk.f32.mxu1 %vm699_vm0, %v7551_v47 }
  0xe9   : > { %6382 = vmatmul.mubr.msk.f32.gmra.mrb[10].mxu0 %vm699_vm0, %v9309_v56 }
  0xea   : > { %6384 = vmatprep.mubr.msk.f32.mxu0 %vm699_vm0, %v9310_v9  ;;  %v9317_v9 = vld [vmem:[#allocation17_spill] sm:$0xff] }
  0xeb   : > { %6212 = vmatmul.mubr.msk.f32.gmra.mrb[22].mxu1 %vm699_vm0, %v7554_v48 }
  0xec   : > { %6214 = vmatprep.mubr.msk.f32.mxu1 %vm699_vm0, %v7573_v10 }
  0xed   : > { %6385 = vmatmul.mubr.msk.f32.gmra.mrb[12].mxu0 %vm699_vm0, %v9311_v6  ;;  %v9315_v6 = vld [vmem:[#allocation15_spill] sm:$0xff] }
  0xee   : > { %6387 = vmatprep.mubr.msk.f32.mxu0 %vm699_vm0, %v9312_v17  ;;  %v9316_v17 = vld [vmem:[#allocation16_spill] sm:$0xff] }
  0xef   : > { %6215 = vmatmul.mubr.msk.f32.gmra.mrb[24].mxu1 %vm699_vm0, %v7576_v11 }
  0xf0   : > { %6217 = vmatprep.mubr.msk.f32.mxu1 %vm699_vm0, %v7592_v40 }
  0xf1   : > { %6388 = vmatmul.mubr.msk.f32.gmra.mrb[14].mxu0 %vm699_vm0, %v9313_v7  ;;  %v1317_v7 = vrot.slane %v7722_v57, 2 }
  0xf2   : > { %6390 = vmatprep.mubr.msk.f32.mxu0 %vm699_vm0, %v9314_v1  ;;  %v9318_v1 = vld [vmem:[#allocation18_spill] sm:$0xff] }
  0xf3   : > { %6218 = vmatmul.mubr.msk.f32.gmra.mrb[26].mxu1 %vm699_vm0, %v7610_v36 }
  0xf4   : > { %6220 = vmatprep.mubr.msk.f32.mxu1 %vm699_vm0, %v7613_v33 }
  0xf5   : > { %6391 = vmatmul.mubr.msk.f32.gmra.mrb[16].mxu0 %vm699_vm0, %v9315_v6  ;;  %v9319_v6 = vrot.slane %v7613_v33, 2 }
  0xf6   : > { %6393 = vmatprep.mubr.msk.f32.mxu0 %vm699_vm0, %v9316_v17  ;;  %v9321_v17 = vld [vmem:[#allocation19_spill] sm:$0xff] }
  0xf7   : > { %v8105_v56 = vsel %vm1250_vm1, %v9319_v6, %v1317_v7  ;;  %6221 = vmatmul.mubr.msk.f32.gmra.mrb[28].mxu1 %vm699_vm0, %v7722_v57  ;;  %v2139_v6 = vrot.slane %v7735_v22, 2 }
  0xf8   : > { %9320 = vst [vmem:[#allocation31_spill] sm:$0xff] %v8105_v56  ;;  %6267 = vmatprep.mubr.msk.f32.mxu1 %vm699_vm0, %v8105_v56 }
  0xf9   : > { %6394 = vmatmul.mubr.msk.f32.gmra.mrb[18].mxu0 %vm699_vm0, %v9317_v9  ;;  %v9322_v9 = vld [vmem:[#allocation20_spill] sm:$0xff]  ;;  %v8133_v31 = vsel %vm1250_vm1, %v2139_v6, %v2140_v32 }
  0xfa   : > { %6396 = vmatprep.mubr.msk.f32.mxu0 %vm699_vm0, %v9318_v1  ;;  %v9323_v1 = vld [vmem:[#allocation21_spill] sm:$0xff] }
  0xfd   : > { %6397 = vmatmul.mubr.msk.f32.gmra.mrb[20].mxu0 %vm699_vm0, %v9321_v17  ;;  %v8123_v17 = vsel %vm1250_vm1, %v1317_v7, %v1319_v39 }
  0xfe   : > { %6399 = vmatprep.mubr.msk.f32.mxu0 %vm699_vm0, %v9322_v9 }
  0xff   : > { %6268 = vmatmul.mubr.msk.f32.vlgmr.msra.gmra.mrb[28].mxu1 %vm699_vm0, %v8123_v17 }
 0x101   : > { %6400 = vmatmul.mubr.msk.f32.gmra.mrb[22].mxu0 %vm699_vm0, %v9323_v1  ;;  %v8137_v1 = vsel %vm1250_vm1, %v2140_v32, %v2142_v20 }
 0x102   : > { %6402 = vmatprep.mubr.msk.f32.mxu0 %vm699_vm0, %v9324_v34  ;;  %v2144_v34 = vrot.slane %v7976_v61, 2  ;;  %v578_v61 = vld [vmem:[%s9219_s3 + $0x40] sm:$0xff] }
 0x104   : > { %v8144_v39 = vsel %vm1250_vm1, %v2142_v20, %v2144_v34  ;;  %v9348_v34 = vld [vmem:[#allocation21_spill] sm:$0xff] }
 0x105   : > { %6403 = vmatmul.mubr.msk.f32.gmra.mrb[24].mxu0 %vm699_vm0, %v8105_v56 }
 0x106   : > { %6405 = vmatprep.mubr.msk.f32.mxu0 %vm699_vm0, %v8123_v17 }
 0x109   : > { %6406 = vmatmul.mubr.msk.f32.gmra.mrb[26].mxu0 %vm699_vm0, %v8133_v31 }
 0x10a   : > { %6408 = vmatprep.mubr.msk.f32.mxu0 %vm699_vm0, %v8137_v1 }
 0x10d   : > { %6409 = vmatmul.mubr.msk.f32.gmra.mrb[28].mxu0 %vm699_vm0, %v8144_v39 }
 0x10e   : > { %6413 = vmatprep.mubr.msk.f32.mxu0 %vm699_vm0, %v7383_v29  ;;  %v557_v29 = vld [vmem:[%s7704_s15 + $0x20] sm:$0xff] }
 0x111   : > { %6414 = vmatmul.mubr.msk.f32.vlgmr.msra.gmra.mrb[0].mxu0 %vm699_vm0, %v7386_v30  ;;  %v558_v30 = vld [vmem:[%s7704_s15 + $0x28] sm:$0xff] }
 0x112   : > { %6459 = vmatpush3.msra.mxu0 %v8017_v14  ;;  %6416 = vmatprep.mubr.msk.f32.mxu0 %vm699_vm0, %v7405_v37  ;;  %v8207_v37 = vmul.f32 %v7718_v23, %v557_v29  ;;  %v9347_v14 = vld [vmem:[#allocation19_spill] sm:$0xff] }
 0x113   : > { %6505 = vmatprep.subr.mxu0 %v578_v61 }
 0x115   : > { %6417 = vmatmul.mubr.msk.f32.gmra.mrb[2].mxu0 %vm699_vm0, %v7424_v43  ;;  %v8212_v43 = vmul.f32 %v7718_v23, %v558_v30 }
 0x116   : > { %6419 = vmatprep.mubr.msk.f32.mxu0 %vm699_vm0, %v7427_v44  ;;  %v559_v44 = vld [vmem:[%s7704_s15 + $0x30] sm:$0xff] }
 0x119   : > { %6420 = vmatmul.mubr.msk.f32.gmra.mrb[4].mxu0 %vm699_vm0, %v7430_v45  ;;  %v8218_v45 = vmul.f32 %v7718_v23, %v559_v44  ;;  %v2910_v44 = vrot.slane %v8207_v37, 2 }
 0x11a   : > { %6422 = vmatprep.mubr.msk.f32.mxu0 %vm699_vm0, %v7449_v52  ;;  %v9325_v52 = vld [vmem:[#allocation23_spill] sm:$0xff] }
 0x11d   : > { %6423 = vmatmul.mubr.msk.f32.gmra.mrb[6].mxu0 %vm699_vm0, %v7452_v53  ;;  %v9326_v53 = vld [vmem:[#allocation24_spill] sm:$0xff] }
 0x11e   : > { %6425 = vmatprep.mubr.msk.f32.mxu0 %vm699_vm0, %v7468_v59  ;;  %v9327_v59 = vld [vmem:[#allocation25_spill] sm:$0xff] }
 0x121   : > { %6426 = vmatmul.mubr.msk.f32.gmra.mrb[8].mxu0 %vm699_vm0, %v7486_v3  ;;  %v9328_v3 = vld [vmem:[#allocation26_spill] sm:$0xff] }
 0x122   : > { %6428 = vmatprep.mubr.msk.f32.mxu0 %vm699_vm0, %v7489_v4  ;;  %v9329_v4 = vld [vmem:[#allocation27_spill] sm:$0xff] }
 0x125   : > { %6429 = vmatmul.mubr.msk.f32.gmra.mrb[10].mxu0 %vm699_vm0, %v7492_v5  ;;  %v9330_v5 = vld [vmem:[#allocation28_spill] sm:$0xff] }
 0x126   : > { %6431 = vmatprep.mubr.msk.f32.mxu0 %vm699_vm0, %v7511_v18  ;;  %v9331_v18 = vld [vmem:[#allocation29_spill] sm:$0xff] }
 0x129   : > { %6432 = vmatmul.mubr.msk.f32.gmra.mrb[12].mxu0 %vm699_vm0, %v7514_v19  ;;  %v9332_v19 = vld [vmem:[#allocation30_spill] sm:$0xff] }
 0x12a   : > { %6434 = vmatprep.mubr.msk.f32.mxu0 %vm699_vm0, %v7530_v27  ;;  %v560_v27 = vld [vmem:[%s7704_s15 + $0x38] sm:$0x3] }
 0x12d   : > { %6435 = vmatmul.mubr.msk.f32.gmra.mrb[14].mxu0 %vm699_vm0, %v7548_v42  ;;  %v8278_v42 = vmul.f32 %v7718_v23, %v560_v27 }
 0x12e   : > { %6437 = vmatprep.mubr.msk.f32.mxu0 %vm699_vm0, %v7551_v47  ;;  %v2655_v47 = vrot.slane %v8218_v45, 1 }
 0x131   : > { %6438 = vmatmul.mubr.msk.f32.gmra.mrb[16].mxu0 %vm699_vm0, %v7554_v48 }
 0x132   : > { %6440 = vmatprep.mubr.msk.f32.mxu0 %vm699_vm0, %v7573_v10  ;;  %v2657_v10 = vrot.slane %v8278_v42, 1 }
 0x135   : > { %6441 = vmatmul.mubr.msk.f32.gmra.mrb[18].mxu0 %vm699_vm0, %v7576_v11 }
 0x136   : > { %6443 = vmatprep.mubr.msk.f32.mxu0 %vm699_vm0, %v7592_v40  ;;  %v2658_v40 = vsel %vm628_vm2, %v2655_v47, %v2657_v10  ;;  %v8422_v10 = vld [vmem:[%s9222_s6] sm:$0xff] }
 0x139   : > { %6444 = vmatmul.mubr.msk.f32.gmra.mrb[20].mxu0 %vm699_vm0, %v7610_v36  ;;  %v2653_v36 = vrot.slane %v8212_v43, 1 }
 0x13a   : > { %6446 = vmatprep.mubr.msk.f32.mxu0 %vm699_vm0, %v7613_v33  ;;  %v2652_v33 = vrot.slane %v8207_v37, 1 }
 0x13b   : > { %v2656_v11 = vsel %vm628_vm2, %v2653_v36, %v2655_v47 }
 0x13c   : > { %v2654_v48 = vsel %vm628_vm2, %v2652_v33, %v2653_v36 }
 0x13d   : > { %6447 = vmatmul.mubr.msk.f32.gmra.mrb[22].mxu0 %vm699_vm0, %v7722_v57  ;;  %v9333_v57 = vld [vmem:[#allocation5_spill] sm:$0xff] }
 0x13e   : > { %6449 = vmatprep.mubr.msk.f32.mxu0 %vm699_vm0, %v7735_v22  ;;  %v9334_v22 = vld [vmem:[#allocation6_spill] sm:$0xff] }
 0x141   : > { %6450 = vmatmul.mubr.msk.f32.gmra.mrb[24].mxu0 %vm699_vm0, %v7741_v24  ;;  %v9335_v24 = vld [vmem:[#allocation7_spill] sm:$0xff] }
 0x142   : > { %6452 = vmatprep.mubr.msk.f32.mxu0 %vm699_vm0, %v7754_v16  ;;  %v9337_v16 = vld [vmem:[#allocation9_spill] sm:$0xff] }
 0x145   : > { %6453 = vmatmul.mubr.msk.f32.gmra.mrb[26].mxu0 %vm699_vm0, %v8207_v37 }
 0x146   : > { %6455 = vmatprep.mubr.msk.f32.mxu0 %vm699_vm0, %v8212_v43 }
 0x149   : > { %6456 = vmatmul.mubr.msk.f32.gmra.mrb[28].mxu0 %vm699_vm0, %v8218_v45 }
 0x14a   : > { %6460 = vmatprep.mubr.msk.f32.mxu0 %vm699_vm0, %v7747_v26  ;;  %v9336_v26 = vld [vmem:[#allocation8_spill] sm:$0xff] }
 0x14d   : > { %6461 = vmatmul.mubr.msk.f32.vlgmr.msra.gmra.mrb[0].mxu0 %vm699_vm0, %v7761_v55 }
 0x14e   : > { %6506 = vmatpush3.msra.mxu0 %v578_v61  ;;  %6463 = vmatprep.mubr.msk.f32.mxu0 %vm699_vm0, %v7766_v35  ;;  %v9338_v35 = vld [vmem:[#allocation10_spill] sm:$0xff] }
 0x14f   : > { %v9349_v61 = vld [vmem:[#allocation22_spill] sm:$0xff] }
 0x151   : > { %6464 = vmatmul.mubr.msk.f32.gmra.mrb[2].mxu0 %vm699_vm0, %v9325_v52  ;;  %v2911_v52 = vrot.slane %v8212_v43, 2 }
 0x152   : > { %6466 = vmatprep.mubr.msk.f32.mxu0 %vm699_vm0, %v7781_v63  ;;  %v9339_v63 = vld [vmem:[#allocation11_spill] sm:$0xff] }
 0x155   : > { %6467 = vmatmul.mubr.msk.f32.gmra.mrb[4].mxu0 %vm699_vm0, %v9326_v53  ;;  %v2913_v53 = vrot.slane %v8218_v45, 2 }
 0x156   : > { %6469 = vmatprep.mubr.msk.f32.mxu0 %vm699_vm0, %v9327_v59 }
 0x157   : > { %v2914_v37 = vsel %vm1250_vm1, %v2911_v52, %v2913_v53 }
 0x159   : > { %6470 = vmatmul.mubr.msk.f32.gmra.mrb[6].mxu0 %vm699_vm0, %v9328_v3 }
 0x15a   : > { %6472 = vmatprep.mubr.msk.f32.mxu0 %vm699_vm0, %v7820_v60 }
 0x15d   : > { %6473 = vmatmul.mubr.msk.f32.gmra.mrb[8].mxu0 %vm699_vm0, %v9329_v4 }
 0x15e   : > { %6475 = vmatprep.mubr.msk.f32.mxu0 %vm699_vm0, %v9330_v5 }
 0x161   : > { %6476 = vmatmul.mubr.msk.f32.gmra.mrb[10].mxu0 %vm699_vm0, %v9331_v18 }
 0x162   : > { %6478 = vmatprep.mubr.msk.f32.mxu0 %vm699_vm0, %v7853_v25 }
 0x165   : > { %6479 = vmatmul.mubr.msk.f32.gmra.mrb[12].mxu0 %vm699_vm0, %v7865_v62  ;;  %v9340_v62 = vld [vmem:[#allocation12_spill] sm:$0xff] }
 0x166   : > { %6481 = vmatprep.mubr.msk.f32.mxu0 %vm699_vm0, %v7870_v28  ;;  %v9341_v28 = vld [vmem:[#allocation13_spill] sm:$0xff] }
 0x169   : > { %6482 = vmatmul.mubr.msk.f32.gmra.mrb[14].mxu0 %vm699_vm0, %v7882_v38 }
 0x16a   : > { %6484 = vmatprep.mubr.msk.f32.mxu0 %vm699_vm0, %v7886_v12 }
 0x16d   : > { %6485 = vmatmul.mubr.msk.f32.gmra.mrb[16].mxu0 %vm699_vm0, %v9332_v19 }
 0x16e   : > { %6487 = vmatprep.mubr.msk.f32.mxu0 %vm699_vm0, %v7903_v21  ;;  %v9342_v21 = vld [vmem:[#allocation14_spill] sm:$0xff] }
 0x171   : > { %6488 = vmatmul.mubr.msk.f32.gmra.mrb[18].mxu0 %vm699_vm0, %v7915_v51  ;;  %v9343_v51 = vld [vmem:[#allocation15_spill] sm:$0xff] }
 0x172   : > { %6490 = vmatprep.mubr.msk.f32.mxu0 %vm699_vm0, %v7920_v2 }
 0x175   : > { %6491 = vmatmul.mubr.msk.f32.gmra.mrb[20].mxu0 %vm699_vm0, %v7935_v15 }
 0x176   : > { %6493 = vmatprep.mubr.msk.f32.mxu0 %vm699_vm0, %v7939_v58  ;;  %v9344_v58 = vld [vmem:[#allocation16_spill] sm:$0xff] }
 0x179   : > { %6494 = vmatmul.mubr.msk.f32.gmra.mrb[22].mxu0 %vm699_vm0, %v7950_v50  ;;  %v9345_v50 = vld [vmem:[#allocation17_spill] sm:$0xff] }
 0x17a   : > { %6496 = vmatprep.mubr.msk.f32.mxu0 %vm699_vm0, %v7989_v8 }
 0x17d   : > { %6497 = vmatmul.mubr.msk.f32.gmra.mrb[24].mxu0 %vm699_vm0, %v7993_v0 }
 0x17e   : > { %6499 = vmatprep.mubr.msk.f32.mxu0 %vm699_vm0, %v8004_v13  ;;  %v9346_v13 = vld [vmem:[#allocation18_spill] sm:$0xff] }
 0x181   : > { %6500 = vmatmul.mubr.msk.f32.gmra.mrb[26].mxu0 %vm699_vm0, %v2654_v48  ;;  %v580_v48 = vld [vmem:[%s9222_s6 + $0x8] sm:$0xff] }
 0x182   : > { %6502 = vmatprep.mubr.msk.f32.mxu0 %vm699_vm0, %v2656_v11  ;;  %6552 = vmatprep.subr.mxu1 %v580_v48  ;;  %v3272_v11 = vlaneseq }
 0x183   : > { %6553 = vmatpush3.msra.mxu1 %v580_v48 }
 0x184   : > { %6578 = vmatprep.subr.mxu1 %v8422_v10 }
 0x185   : > { %6503 = vmatmul.mubr.msk.f32.gmra.mrb[28].mxu0 %vm699_vm0, %v2658_v40 }
 0x186   : > { %6507 = vmatprep.mubr.msk.f32.mxu0 %vm699_vm0, %v7420_v41 }
 0x189   : > { %6508 = vmatmul.mubr.msk.f32.vlgmr.msra.gmra.mrb[0].mxu0 %vm699_vm0, %v7437_v46 }
 0x18a   : > { %6510 = vmatprep.mubr.msk.f32.mxu0 %vm699_vm0, %v7442_v49 }
 0x18d   : > { %6511 = vmatmul.mubr.msk.f32.gmra.mrb[2].mxu0 %vm699_vm0, %v7459_v54 }
 0x18e   : > { %6513 = vmatprep.mubr.msk.f32.mxu0 %vm699_vm0, %v9333_v57 }
 0x191   : > { %6514 = vmatmul.mubr.msk.f32.gmra.mrb[4].mxu0 %vm699_vm0, %v9334_v22  ;;  %v8428_v22 = vld [vmem:[%s9220_s4] ss:$0 sm:$0xff] }
 0x192   : > { %6516 = vmatprep.mubr.msk.f32.mxu0 %vm699_vm0, %v9335_v24  ;;  %v8310_v55 = vpop.f32.mrb[0].mxu1 }
 0x193   : > { %v8312_v49 = vpop.f32.mrb[1].mxu1 }
 0x195   : > { %6517 = vmatmul.mubr.msk.f32.gmra.mrb[6].mxu0 %vm699_vm0, %v9336_v26 }
 0x196   : > { %6519 = vmatprep.mubr.msk.f32.mxu0 %vm699_vm0, %v9337_v16  ;;  %v8318_v60 = vpop.f32.mrb[2].mxu1 }
 0x197   : > { %v8320_v25 = vpop.f32.mrb[3].mxu1 }
 0x199   : > { %6520 = vmatmul.mubr.msk.f32.gmra.mrb[8].mxu0 %vm699_vm0, %v9338_v35 }
 0x19a   : > { %6522 = vmatprep.mubr.msk.f32.mxu0 %vm699_vm0, %v9339_v63  ;;  %v8326_v38 = vpop.f32.mrb[4].mxu1 }
 0x19b   : > { %v8328_v12 = vpop.f32.mrb[5].mxu1 }
 0x19d   : > { %6523 = vmatmul.mubr.msk.f32.gmra.mrb[10].mxu0 %vm699_vm0, %v9340_v62 }
 0x19e   : > { %6525 = vmatprep.mubr.msk.f32.mxu0 %vm699_vm0, %v9341_v28  ;;  %v8334_v2 = vpop.f32.mrb[6].mxu1 }
 0x19f   : > { %v8336_v15 = vpop.f32.mrb[7].mxu1 }
 0x1a1   : > { %6526 = vmatmul.mubr.msk.f32.gmra.mrb[12].mxu0 %vm699_vm0, %v9342_v21 }
 0x1a2   : > { %6528 = vmatprep.mubr.msk.f32.mxu0 %vm699_vm0, %v9343_v51  ;;  %v8342_v8 = vpop.f32.mrb[8].mxu1  ;;  %v8434_v51 = vld [vmem:[%s9221_s5] ss:$0 sm:$0xff] }
 0x1a3   : > { %v8344_v0 = vpop.f32.mrb[9].mxu1 }
 0x1a5   : > { %6529 = vmatmul.mubr.msk.f32.gmra.mrb[14].mxu0 %vm699_vm0, %v9344_v58 }
 0x1a6   : > { %6531 = vmatprep.mubr.msk.f32.mxu0 %vm699_vm0, %v9345_v50  ;;  %v8350_v20 = vpop.f32.mrb[10].mxu1 }
 0x1a7   : > { %v8352_v32 = vpop.f32.mrb[11].mxu1 }
 0x1a9   : > { %6532 = vmatmul.mubr.msk.f32.gmra.mrb[16].mxu0 %vm699_vm0, %v9346_v13 }
 0x1aa   : > { %6534 = vmatprep.mubr.msk.f32.mxu0 %vm699_vm0, %v9347_v14  ;;  %v8358_v7 = vpop.f32.mrb[12].mxu1 }
 0x1ab   : > { %v8360_v6 = vpop.f32.mrb[13].mxu1 }
 0x1ad   : > { %6535 = vmatmul.mubr.msk.f32.gmra.mrb[18].mxu0 %vm699_vm0, %v9322_v9 }
 0x1ae   : > { %6537 = vmatprep.mubr.msk.f32.mxu0 %vm699_vm0, %v9348_v34  ;;  %v8366_v29 = vpop.f32.mrb[14].mxu1 }
 0x1af   : > { %v8368_v30 = vpop.f32.mrb[15].mxu1 }
 0x1b1   : > { %6538 = vmatmul.mubr.msk.f32.gmra.mrb[20].mxu0 %vm699_vm0, %v9349_v61 }
 0x1b2   : > { %6540 = vmatprep.mubr.msk.f32.mxu0 %vm699_vm0, %v8105_v56  ;;  %v8377_v59 = vpop.f32.mrb[16].mxu1 }
 0x1b3   : > { %v8379_v3 = vpop.f32.mrb[17].mxu1 }
 0x1b5   : > { %6541 = vmatmul.mubr.msk.f32.gmra.mrb[22].mxu0 %vm699_vm0, %v8123_v17  ;;  %v2912_v17 = vsel %vm1250_vm1, %v2910_v44, %v2911_v52  ;;  %v8438_v44 = vshrl.u32 %v3272_v11, 7 }
 0x1b6   : > { %6543 = vmatprep.mubr.msk.f32.mxu0 %vm699_vm0, %v8133_v31  ;;  %v2915_v31 = vrot.slane %v8278_v42, 2  ;;  %v8388_v4 = vpop.f32.mrb[18].mxu1 }
 0x1b7   : > { %v8390_v43 = vpop.f32.mrb[19].mxu1  ;;  %vm3276_vm3 = vcmp.eq.s32.totalorder %v8438_v44, 0  ;;  %v8448_v11 = vadd.s32 16, %v8438_v44 }
 0x1b8   : > { %v2916_v45 = vsel %vm1250_vm1, %v2913_v53, %v2915_v31 }
 0x1b9   : > { %6544 = vmatmul.mubr.msk.f32.gmra.mrb[24].mxu0 %vm699_vm0, %v8137_v1  ;;  %vm3281_vm4 = vcmp.ge.s32.totalorder %v8448_v11, 17 }
 0x1ba   : > { %6546 = vmatprep.mubr.msk.f32.mxu0 %vm699_vm0, %v8144_v39  ;;  %v8395_v1 = vpop.f32.mrb[20].mxu1 }
 0x1bb   : > { %v8397_v5 = vpop.f32.mrb[21].mxu1 }
 0x1bd   : > { %6547 = vmatmul.mubr.msk.f32.gmra.mrb[26].mxu0 %vm699_vm0, %v2912_v17 }
 0x1be   : > { %6549 = vmatprep.mubr.msk.f32.mxu0 %vm699_vm0, %v2914_v37  ;;  %v8400_v39 = vpop.f32.mrb[22].mxu1 }
 0x1bf   : > { %v8402_v18 = vpop.f32.mrb[23].mxu1 }
 0x1c1   : > { %6550 = vmatmul.mubr.msk.f32.gmra.mrb[28].mxu0 %vm699_vm0, %v2916_v45 }
 0x1c2   : > { %v8404_v19 = vpop.f32.mrb[24].mxu1 }
 0x1c3   : > { %v8406_v27 = vpop.f32.mrb[25].mxu1 }
 0x1c6   : > { %v8408_v33 = vpop.f32.mrb[26].mxu1 }
 0x1c7   : > { %v8410_v36 = vpop.f32.mrb[27].mxu1 }
 0x1d2   : > { %v8412_v42 = vpop.f32.mrb[28].mxu1 }
 0x1d3   : > { %v8414_v47 = vpop.f32.mrb[29].mxu1 }
 0x25c   : > { %v6509_v40 = vpop.f32.mrb[0].mxu0 }
 0x25d   : > { %v6788_v16 = vadd.f32 %v6509_v40, %v8310_v55  ;;  %v2989_v62 = vpop.f32.mrb[1].mxu0 }
 0x25e   : > { %v6789_v13 = vadd.f32 %v2989_v62, %v8312_v49 }
 0x25f   : > { %v3176_v34 = vmul.f32 %v6788_v16, %v8428_v22 }
 0x260   : > { %v3175_v52 = vmul.f32 %v6789_v13, %v8428_v22  ;;  %v6512_v53 = vpop.f32.mrb[2].mxu0  ;;  %v9350_v13 = vld [vmem:[#allocation3_spill] sm:$0xff] }
 0x261   : > { %v3213_v17 = vadd.f32 %v8434_v51, %v3176_v34  ;;  %v6790_v31 = vadd.f32 %v6512_v53, %v8318_v60  ;;  %v2999_v55 = vpop.f32.mrb[3].mxu0 }
 0x262   : > { %v3212_v37 = vadd.f32 %v8434_v51, %v3175_v52  ;;  %v6791_v45 = vadd.f32 %v2999_v55, %v8320_v25 }
 0x263   : > { %v3243_v48 = vmax.f32 %v3213_v17, 0.0  ;;  %v3178_v49 = vmul.f32 %v6790_v31, %v8428_v22 }
 0x264   : > { %v3242_v40 = vmax.f32 %v3212_v37, 0.0  ;;  %v3177_v16 = vmul.f32 %v6791_v45, %v8428_v22  ;;  %v6515_v62 = vpop.f32.mrb[4].mxu0 }
 0x265   : > { %v8452_v34 = vmul.f32 %v3243_v48, %v9350_v13  ;;  %v3215_v60 = vadd.f32 %v8434_v51, %v3178_v49  ;;  %v6792_v52 = vadd.f32 %v6515_v62, %v8326_v38  ;;  %v3009_v25 = vpop.f32.mrb[5].mxu0 }
 0x266   : > { %v3291_v53 = vsel %vm3276_vm3, 0.0, %v3242_v40  ;;  %v3214_v17 = vadd.f32 %v8434_v51, %v3177_v16  ;;  %v6793_v31 = vadd.f32 %v3009_v25, %v8328_v12 }
 0x267   : > { %v8461_v55 = vmul.f32 %v3291_v53, %v9350_v13  ;;  %v3245_v37 = vmax.f32 %v3215_v60, 0.0  ;;  %v3180_v45 = vmul.f32 %v6792_v52, %v8428_v22  ;;  %v3352_v62 = vrot.slane %v8452_v34, 1 }
 0x268   : > { %v3244_v48 = vmax.f32 %v3214_v17, 0.0  ;;  %v3179_v49 = vmul.f32 %v6793_v31, %v8428_v22  ;;  %v6518_v38 = vpop.f32.mrb[6].mxu0  ;;  %v3746_v31 = vrot.slane %v8452_v34, 2 }
 0x269   : > { %v8469_v40 = vsel %vm3276_vm3, 0.0, %v3245_v37  ;;  %v3217_v12 = vadd.f32 %v8434_v51, %v3180_v45  ;;  %v6794_v16 = vadd.f32 %v6518_v38, %v8334_v2  ;;  %v3019_v25 = vpop.f32.mrb[7].mxu0  ;;  %v3351_v60 = vrot.slane %v8461_v55, 1 }
 0x26a   : > { %v3293_v52 = vsel %vm3281_vm4, 0.0, %v3244_v48  ;;  %v3216_v53 = vadd.f32 %v8434_v51, %v3179_v49  ;;  %v6795_v17 = vadd.f32 %v3019_v25, %v8336_v15  ;;  %v3356_v48 = vrot.slane %v8469_v40, 1 }
 0x26b   : > { %v3323_v61 = vmul.f32 %v3293_v52, %v9350_v13  ;;  %v3247_v37 = vmax.f32 %v3217_v12, 0.0  ;;  %v3182_v56 = vmul.f32 %v6794_v16, %v8428_v22  ;;  %v3353_v45 = vsel %vm628_vm2, %v3351_v60, %v3352_v62 }
 0x26c   : > { %v8482_v2 = vmax.f32 %v3216_v53, 0.0  ;;  %v3181_v38 = vmul.f32 %v6795_v17, %v8428_v22  ;;  %v6521_v14 = vpop.f32.mrb[8].mxu0  ;;  %6554 = vmatprep.mubr.msk.f32.mxu1 %vm699_vm0, %v3353_v45  ;;  %v3745_v15 = vrot.slane %v8461_v55, 2 }
 0x26d   : > { %v3354_v49 = vrot.slane %v3323_v61, 1  ;;  %v3748_v25 = vrot.slane %v3323_v61, 2  ;;  %v8490_v13 = vsel %vm3281_vm4, 0.0, %v3247_v37  ;;  %v3219_v12 = vadd.f32 %v8434_v51, %v3182_v56  ;;  %v3029_v16 = vpop.f32.mrb[9].mxu0  ;;  %v8504_v37 = vld [vmem:[%s9222_s6 + $0x10] sm:$0xff] }
 0x26e   : > { %v3218_v60 = vadd.f32 %v8434_v51, %v3181_v38  ;;  %v6796_v52 = vadd.f32 %v6521_v14, %v8342_v8  ;;  %v6797_v53 = vadd.f32 %v3029_v16, %v8344_v0  ;;  %v3357_v17 = vrot.slane %v8482_v2, 1 }
 0x26f   : > { %v8497_v45 = vmax.f32 %v3219_v12, 0.0  ;;  %v3355_v9 = vsel %vm628_vm2, %v3352_v62, %v3354_v49  ;;  %v3359_v61 = vrot.slane %v8490_v13, 1  ;;  %v8507_v56 = vsel %vm1250_vm1, %v3745_v15, %v3746_v31 }
 0x270   : > { %v3248_v38 = vmax.f32 %v3218_v60, 0.0  ;;  %v3184_v8 = vmul.f32 %v6796_v52, %v8428_v22  ;;  %v3183_v0 = vmul.f32 %v6797_v53, %v8428_v22  ;;  %v6524_v14 = vpop.f32.mrb[10].mxu0  ;;  %6555 = vmatmul.mubr.msk.f32.vlgmr.msra.gmra.mrb[30].mxu1 %vm699_vm0, %v3355_v9  ;;  %v8513_v62 = vsel %vm628_vm2, %v3356_v48, %v3357_v17 }
 0x271   : > { %v6798_v49 = vadd.f32 %v6524_v14, %v8350_v20  ;;  %v3039_v12 = vpop.f32.mrb[11].mxu0  ;;  %6557 = vmatprep.mubr.msk.f32.mxu1 %vm699_vm0, %v8513_v62  ;;  %6579 = vmatpush3.msra.mxu1 %v8422_v10  ;;  %v8520_v15 = vsel %vm1250_vm1, %v3746_v31, %v3748_v25  ;;  %v8532_v52 = vsel %vm628_vm2, %v3357_v17, %v3359_v61  ;;  %v3362_v31 = vrot.slane %v8497_v45, 1 }
 0x272   : > { %v8524_v16 = vsel %vm3276_vm3, 0.0, %v3248_v38  ;;  %v3221_v9 = vadd.f32 %v8434_v51, %v3184_v8  ;;  %v3220_v48 = vadd.f32 %v8434_v51, %v3183_v0  ;;  %v6799_v60 = vadd.f32 %v3039_v12, %v8352_v32  ;;  %6604 = vmatprep.subr.mxu1 %v8504_v37 }
 0x273   : > { %v3186_v20 = vmul.f32 %v6798_v49, %v8428_v22  ;;  %v3361_v10 = vrot.slane %v8524_v16, 1 }
 0x274   : > { %v3251_v25 = vmax.f32 %v3221_v9, 0.0  ;;  %v3250_v53 = vmax.f32 %v3220_v48, 0.0  ;;  %v3185_v38 = vmul.f32 %v6799_v60, %v8428_v22  ;;  %v6527_v8 = vpop.f32.mrb[12].mxu0  ;;  %6558 = vmatmul.mubr.msk.f32.gmra.mrb[32].mxu1 %vm699_vm0, %v8532_v52 }
 0x275   : > { %v3223_v32 = vadd.f32 %v8434_v51, %v3186_v20  ;;  %v6800_v0 = vadd.f32 %v6527_v8, %v8358_v7  ;;  %v3049_v14 = vpop.f32.mrb[13].mxu0  ;;  %v8542_v17 = vsel %vm628_vm2, %v3361_v10, %v3362_v31 }
 0x276   : > { %v8546_v61 = vsel %vm3276_vm3, 0.0, %v3251_v25  ;;  %v8550_v49 = vsel %vm3281_vm4, 0.0, %v3250_v53  ;;  %v3222_v12 = vadd.f32 %v8434_v51, %v3185_v38  ;;  %v6801_v9 = vadd.f32 %v3049_v14, %v8360_v6  ;;  %6560 = vmatprep.mubr.msk.f32.mxu1 %vm699_vm0, %v8542_v17 }
 0x277   : > { %v3253_v7 = vmax.f32 %v3223_v32, 0.0  ;;  %v3188_v48 = vmul.f32 %v6800_v0, %v8428_v22  ;;  %v3364_v60 = vrot.slane %v8550_v49, 1  ;;  %v3366_v53 = vrot.slane %v8546_v61, 1 }
 0x278   : > { %v8558_v20 = vmax.f32 %v3222_v12, 0.0  ;;  %v3187_v10 = vmul.f32 %v6801_v9, %v8428_v22  ;;  %v6530_v25 = vpop.f32.mrb[14].mxu0 }
 0x279   : > { %v8564_v38 = vsel %vm3281_vm4, 0.0, %v3253_v7  ;;  %v3225_v6 = vadd.f32 %v8434_v51, %v3188_v48  ;;  %v6802_v8 = vadd.f32 %v6530_v25, %v8366_v29  ;;  %v3059_v32 = vpop.f32.mrb[15].mxu0  ;;  %v8569_v0 = vsel %vm628_vm2, %v3362_v31, %v3364_v60 }
 0x27a   : > { %v3224_v14 = vadd.f32 %v8434_v51, %v3187_v10  ;;  %v6803_v12 = vadd.f32 %v3059_v32, %v8368_v30  ;;  %6561 = vmatmul.mubr.msk.f32.gmra.mrb[34].mxu1 %vm699_vm0, %v8569_v0  ;;  %v3367_v9 = vrot.slane %v8558_v20, 1  ;;  %v3369_v7 = vrot.slane %v8564_v38, 1 }
 0x27b   : > { %v8577_v58 = vmax.f32 %v3225_v6, 0.0  ;;  %v3190_v48 = vmul.f32 %v6802_v8, %v8428_v22 }
 0x27c   : > { %v3254_v29 = vmax.f32 %v3224_v14, 0.0  ;;  %v3189_v25 = vmul.f32 %v6803_v12, %v8428_v22  ;;  %v6533_v31 = vpop.f32.mrb[16].mxu0  ;;  %v8582_v60 = vsel %vm628_vm2, %v3366_v53, %v3367_v9  ;;  %v8585_v30 = vsel %vm628_vm2, %v3367_v9, %v3369_v7 }
 0x27d   : > { %v3227_v10 = vadd.f32 %v8434_v51, %v3190_v48  ;;  %v6804_v32 = vadd.f32 %v6533_v31, %v8377_v59  ;;  %v3069_v50 = vpop.f32.mrb[17].mxu0  ;;  %6563 = vmatprep.mubr.msk.f32.mxu1 %vm699_vm0, %v8582_v60  ;;  %v3372_v9 = vrot.slane %v8577_v58, 1 }
 0x27e   : > { %v8593_v6 = vsel %vm3276_vm3, 0.0, %v3254_v29  ;;  %v3226_v8 = vadd.f32 %v8434_v51, %v3189_v25  ;;  %v6805_v53 = vadd.f32 %v3069_v50, %v8379_v3  ;;  %6564 = vmatmul.mubr.msk.f32.gmra.mrb[36].mxu1 %vm699_vm0, %v8585_v30 }
 0x27f   : > { %v3257_v14 = vmax.f32 %v3227_v10, 0.0  ;;  %v3192_v12 = vmul.f32 %v6804_v32, %v8428_v22  ;;  %v3371_v59 = vrot.slane %v8593_v6, 1 }
 0x280   : > { %v3256_v7 = vmax.f32 %v3226_v8, 0.0  ;;  %v3191_v48 = vmul.f32 %v6805_v53, %v8428_v22  ;;  %v6536_v31 = vpop.f32.mrb[18].mxu0 }
 0x281   : > { %v8605_v29 = vsel %vm3276_vm3, 0.0, %v3257_v14  ;;  %v3229_v50 = vadd.f32 %v8434_v51, %v3192_v12  ;;  %v6806_v3 = vadd.f32 %v6536_v31, %v8388_v4  ;;  %v3079_v25 = vpop.f32.mrb[19].mxu0  ;;  %v8610_v10 = vsel %vm628_vm2, %v3371_v59, %v3372_v9 }
 0x282   : > { %v8614_v32 = vsel %vm3281_vm4, 0.0, %v3256_v7  ;;  %v3228_v8 = vadd.f32 %v8434_v51, %v3191_v48  ;;  %v6807_v53 = vadd.f32 %v3079_v25, %v8390_v43  ;;  %6566 = vmatprep.mubr.msk.f32.mxu1 %vm699_vm0, %v8610_v10  ;;  %v3376_v7 = vrot.slane %v8605_v29, 1 }
 0x283   : > { %v3259_v14 = vmax.f32 %v3229_v50, 0.0  ;;  %v3194_v12 = vmul.f32 %v6806_v3, %v8428_v22  ;;  %v3374_v4 = vrot.slane %v8614_v32, 1 }
 0x284   : > { %v8622_v31 = vmax.f32 %v3228_v8, 0.0  ;;  %v3193_v59 = vmul.f32 %v6807_v53, %v8428_v22  ;;  %v6539_v28 = vpop.f32.mrb[20].mxu0 }
 0x285   : > { %v8628_v48 = vsel %vm3281_vm4, 0.0, %v3259_v14  ;;  %v3231_v43 = vadd.f32 %v8434_v51, %v3194_v12  ;;  %v6808_v25 = vadd.f32 %v6539_v28, %v8395_v1  ;;  %v3089_v50 = vpop.f32.mrb[21].mxu0  ;;  %v8633_v3 = vsel %vm628_vm2, %v3372_v9, %v3374_v4 }
 0x286   : > { %v3230_v8 = vadd.f32 %v8434_v51, %v3193_v59  ;;  %v6809_v21 = vadd.f32 %v3089_v50, %v8397_v5  ;;  %6567 = vmatmul.mubr.msk.f32.gmra.mrb[38].mxu1 %vm699_vm0, %v8633_v3  ;;  %v3377_v53 = vrot.slane %v8622_v31, 1  ;;  %v3379_v14 = vrot.slane %v8628_v48, 1 }
 0x287   : > { %v8641_v35 = vmax.f32 %v3231_v43, 0.0  ;;  %v3196_v12 = vmul.f32 %v6808_v25, %v8428_v22 }
 0x288   : > { %v3260_v28 = vmax.f32 %v3230_v8, 0.0  ;;  %v3195_v1 = vmul.f32 %v6809_v21, %v8428_v22  ;;  %v6542_v9 = vpop.f32.mrb[22].mxu0  ;;  %v8646_v4 = vsel %vm628_vm2, %v3376_v7, %v3377_v53  ;;  %v8649_v5 = vsel %vm628_vm2, %v3377_v53, %v3379_v14 }
 0x289   : > { %v3233_v59 = vadd.f32 %v8434_v51, %v3196_v12  ;;  %v6810_v50 = vadd.f32 %v6542_v9, %v8400_v39  ;;  %v3099_v63 = vpop.f32.mrb[23].mxu0  ;;  %6569 = vmatprep.mubr.msk.f32.mxu1 %vm699_vm0, %v8646_v4  ;;  %v3382_v53 = vrot.slane %v8641_v35, 1 }
 0x28a   : > { %v8657_v43 = vsel %vm3276_vm3, 0.0, %v3260_v28  ;;  %v3232_v21 = vadd.f32 %v8434_v51, %v3195_v1  ;;  %v6811_v7 = vadd.f32 %v3099_v63, %v8402_v18  ;;  %6570 = vmatmul.mubr.msk.f32.gmra.mrb[40].mxu1 %vm699_vm0, %v8649_v5 }
 0x28b   : > { %v3263_v25 = vmax.f32 %v3233_v59, 0.0  ;;  %v3198_v8 = vmul.f32 %v6810_v50, %v8428_v22  ;;  %v3381_v39 = vrot.slane %v8657_v43, 1 }
 0x28c   : > { %v3262_v14 = vmax.f32 %v3232_v21, 0.0  ;;  %v3197_v12 = vmul.f32 %v6811_v7, %v8428_v22  ;;  %v6545_v9 = vpop.f32.mrb[24].mxu0 }
 0x28d   : > { %v8669_v28 = vsel %vm3276_vm3, 0.0, %v3263_v25  ;;  %v3235_v63 = vadd.f32 %v8434_v51, %v3198_v8  ;;  %v6812_v18 = vadd.f32 %v6545_v9, %v8404_v19  ;;  %v3109_v1 = vpop.f32.mrb[25].mxu0  ;;  %v8674_v59 = vsel %vm628_vm2, %v3381_v39, %v3382_v53 }
 0x28e   : > { %v8678_v50 = vsel %vm3281_vm4, 0.0, %v3262_v14  ;;  %v3234_v21 = vadd.f32 %v8434_v51, %v3197_v12  ;;  %v6813_v7 = vadd.f32 %v3109_v1, %v8406_v27  ;;  %6572 = vmatprep.mubr.msk.f32.mxu1 %vm699_vm0, %v8674_v59  ;;  %v3386_v14 = vrot.slane %v8669_v28, 1 }
 0x28f   : > { %v3265_v25 = vmax.f32 %v3235_v63, 0.0  ;;  %v3200_v8 = vmul.f32 %v6812_v18, %v8428_v22  ;;  %v3384_v19 = vrot.slane %v8678_v50, 1 }
 0x290   : > { %v8686_v9 = vmax.f32 %v3234_v21, 0.0  ;;  %v3199_v39 = vmul.f32 %v6813_v7, %v8428_v22  ;;  %v6548_v24 = vpop.f32.mrb[26].mxu0 }
 0x291   : > { %v8692_v12 = vsel %vm3281_vm4, 0.0, %v3265_v25  ;;  %v8695_v27 = vadd.f32 %v8434_v51, %v3200_v8  ;;  %v6814_v63 = vadd.f32 %v6548_v24, %v8408_v33  ;;  %v3119_v1 = vpop.f32.mrb[27].mxu0  ;;  %v8699_v18 = vsel %vm628_vm2, %v3382_v53, %v3384_v19 }
 0x292   : > { %v3236_v21 = vadd.f32 %v8434_v51, %v3199_v39  ;;  %v6815_v7 = vadd.f32 %v3119_v1, %v8410_v36  ;;  %6573 = vmatmul.mubr.msk.f32.gmra.mrb[42].mxu1 %vm699_vm0, %v8699_v18  ;;  %v3387_v26 = vrot.slane %v8686_v9, 1  ;;  %v3389_v25 = vrot.slane %v8692_v12, 1 }
 0x293   : > { %v3202_v8 = vmul.f32 %v6814_v63, %v8428_v22 }
 0x294   : > { %v3266_v54 = vmax.f32 %v3236_v21, 0.0  ;;  %v3201_v24 = vmul.f32 %v6815_v7, %v8428_v22  ;;  %v6551_v33 = vpop.f32.mrb[28].mxu0  ;;  %v8710_v53 = vsel %vm628_vm2, %v3386_v14, %v3387_v26  ;;  %v8713_v19 = vsel %vm628_vm2, %v3387_v26, %v3389_v25 }
 0x295   : > { %v3239_v36 = vadd.f32 %v8434_v51, %v3202_v8  ;;  %v6816_v39 = vadd.f32 %v6551_v33, %v8412_v42  ;;  %v3129_v1 = vpop.f32.mrb[29].mxu0  ;;  %6575 = vmatprep.mubr.msk.f32.mxu1 %vm699_vm0, %v8710_v53 }
 0x296   : > { %v3238_v63 = vadd.f32 %v8434_v51, %v3201_v24  ;;  %v6817_v21 = vadd.f32 %v3129_v1, %v8414_v47  ;;  %6576 = vmatmul.mubr.msk.f32.gmra.mrb[44].mxu1 %vm699_vm0, %v8713_v19  ;;  %v8728_v26 = vsel %vm3276_vm3, 0.0, %v3266_v54  ;;  %v582_v24 = vld [vmem:[%s9222_s6 + $0x18] sm:$0xff] }
 0x297   : > { %v3269_v14 = vmax.f32 %v3239_v36, 0.0  ;;  %v3204_v7 = vmul.f32 %v6816_v39, %v8428_v22  ;;  %6580 = vmatprep.mubr.msk.f32.mxu1 %vm699_vm0, %v8461_v55 }
 0x298   : > { %v3268_v42 = vmax.f32 %v3238_v63, 0.0  ;;  %v3203_v25 = vmul.f32 %v6817_v21, %v8428_v22 }
 0x299   : > { %v3318_v8 = vsel %vm3276_vm3, 0.0, %v3269_v14  ;;  %v3241_v47 = vadd.f32 %v8434_v51, %v3204_v7 }
 0x29a   : > { %v8739_v33 = vsel %vm3281_vm4, 0.0, %v3268_v42  ;;  %v3240_v55 = vadd.f32 %v8434_v51, %v3203_v25  ;;  %6581 = vmatmul.mubr.msk.f32.vlgmr.msra.gmra.mrb[30].mxu1 %vm699_vm0, %v8452_v34  ;;  %v8748_v22 = vmul.f32 %v3318_v8, %v7718_v23  ;;  %v3751_v25 = vrot.slane %v8482_v2, 2 }
 0x29b   : > { %v3271_v54 = vmax.f32 %v3241_v47, 0.0  ;;  %6605 = vmatpush3.msra.mxu1 %v8504_v37  ;;  %6583 = vmatprep.mubr.msk.f32.mxu1 %vm699_vm0, %v8469_v40  ;;  %v3750_v8 = vrot.slane %v8469_v40, 2  ;;  %v3753_v47 = vrot.slane %v8490_v13, 2 }
 0x29c   : > { %v3270_v44 = vmax.f32 %v3240_v55, 0.0  ;;  %6630 = vmatprep.subr.mxu1 %v582_v24  ;;  %v4654_v34 = vrot.slane %v8748_v22, 1  ;;  %v4824_v37 = vrot.slane %v8748_v22, 2  ;;  %v583_v55 = vld [vmem:[%s9222_s6 + $0x20] sm:$0xff] }
 0x29d   : > { %v3320_v36 = vsel %vm3281_vm4, 0.0, %v3271_v54  ;;  %v8809_v54 = vsel %vm1250_vm1, %v3750_v8, %v3751_v25  ;;  %v8816_v13 = vsel %vm1250_vm1, %v3751_v25, %v3753_v47  ;;  %v3771_v25 = vrot.slane %v8622_v31, 2 }
 0x29e   : > { %v3326_v39 = vmul.f32 %v3320_v36, %v7718_v23  ;;  %v8754_v51 = vmul.f32 %v3270_v44, %v7718_v23  ;;  %6584 = vmatmul.mubr.msk.f32.gmra.mrb[32].mxu1 %vm699_vm0, %v8482_v2  ;;  %v3755_v44 = vrot.slane %v8524_v16, 2  ;;  %v3758_v36 = vrot.slane %v8550_v49, 2 }
 0x29f   : > { %6586 = vmatprep.mubr.msk.f32.mxu1 %vm699_vm0, %v8524_v16  ;;  %v3770_v8 = vrot.slane %v8605_v29, 2 }
 0x2a0   : > { %v4655_v1 = vrot.slane %v8754_v51, 1  ;;  %v4657_v63 = vrot.slane %v3326_v39, 1  ;;  %v4825_v11 = vrot.slane %v8754_v51, 2  ;;  %v4827_v21 = vrot.slane %v3326_v39, 2 }
 0x2a1   : > { %v3761_v39 = vrot.slane %v8558_v20, 2 }
 0x2a2   : > { %6587 = vmatmul.mubr.msk.f32.gmra.mrb[34].mxu1 %vm699_vm0, %v8497_v45  ;;  %v8767_v23 = vsel %vm628_vm2, %v4654_v34, %v4655_v1  ;;  %v8770_v14 = vsel %vm628_vm2, %v4655_v1, %v4657_v63  ;;  %v8773_v7 = vsel %vm1250_vm1, %v4824_v37, %v4825_v11  ;;  %v8776_v42 = vsel %vm1250_vm1, %v4825_v11, %v4827_v21 }
 0x2a3   : > { %6589 = vmatprep.mubr.msk.f32.mxu1 %vm699_vm0, %v8546_v61  ;;  %v3763_v37 = vrot.slane %v8564_v38, 2  ;;  %v3765_v1 = vrot.slane %v8593_v6, 2  ;;  %v3766_v63 = vrot.slane %v8577_v58, 2  ;;  %v3768_v21 = vrot.slane %v8614_v32, 2 }
 0x2a4   : > { %v8861_v32 = vsel %vm1250_vm1, %v3770_v8, %v3771_v25 }
 0x2a5   : > { %v8842_v11 = vsel %vm1250_vm1, %v3761_v39, %v3763_v37  ;;  %v8848_v38 = vsel %vm1250_vm1, %v3765_v1, %v3766_v63  ;;  %v8855_v47 = vsel %vm1250_vm1, %v3766_v63, %v3768_v21  ;;  %v3781_v37 = vrot.slane %v8686_v9, 2 }
 0x2a6   : > { %6590 = vmatmul.mubr.msk.f32.gmra.mrb[36].mxu1 %vm699_vm0, %v8558_v20  ;;  %v3780_v1 = vrot.slane %v8669_v28, 2  ;;  %v3783_v21 = vrot.slane %v8692_v12, 2  ;;  %v584_v12 = vld [vmem:[%s9222_s6 + $0x28] sm:$0xff] }
 0x2a7   : > { %6592 = vmatprep.mubr.msk.f32.mxu1 %vm699_vm0, %v8593_v6 }
 0x2aa   : > { %6593 = vmatmul.mubr.msk.f32.gmra.mrb[38].mxu1 %vm699_vm0, %v8577_v58 }
 0x2ab   : > { %6595 = vmatprep.mubr.msk.f32.mxu1 %vm699_vm0, %v8605_v29 }
 0x2ae   : > { %6596 = vmatmul.mubr.msk.f32.gmra.mrb[40].mxu1 %vm699_vm0, %v8622_v31 }
 0x2af   : > { %6598 = vmatprep.mubr.msk.f32.mxu1 %vm699_vm0, %v8657_v43 }
 0x2b2   : > { %6599 = vmatmul.mubr.msk.f32.gmra.mrb[42].mxu1 %vm699_vm0, %v8641_v35 }
 0x2b3   : > { %6601 = vmatprep.mubr.msk.f32.mxu1 %vm699_vm0, %v8669_v28 }
 0x2b6   : > { %6602 = vmatmul.mubr.msk.f32.gmra.mrb[44].mxu1 %vm699_vm0, %v8686_v9 }
 0x2b7   : > { %6606 = vmatprep.mubr.msk.f32.mxu1 %vm699_vm0, %v8507_v56  ;;  %v3756_v56 = vrot.slane %v8497_v45, 2 }
 0x2b9   : > { %v8829_v34 = vsel %vm1250_vm1, %v3756_v56, %v3758_v36  ;;  %v3776_v36 = vrot.slane %v8641_v35, 2 }
 0x2ba   : > { %6607 = vmatmul.mubr.msk.f32.vlgmr.msra.gmra.mrb[30].mxu1 %vm699_vm0, %v8520_v15  ;;  %v8822_v15 = vsel %vm1250_vm1, %v3755_v44, %v3756_v56  ;;  %v3773_v44 = vrot.slane %v8628_v48, 2  ;;  %v3775_v56 = vrot.slane %v8657_v43, 2 }
 0x2bb   : > { %6631 = vmatpush3.msra.mxu1 %v582_v24  ;;  %6609 = vmatprep.mubr.msk.f32.mxu1 %vm699_vm0, %v8809_v54  ;;  %v3760_v24 = vrot.slane %v8546_v61, 2 }
 0x2bc   : > { %6656 = vmatprep.subr.mxu1 %v583_v55  ;;  %v8874_v48 = vsel %vm1250_vm1, %v3775_v56, %v3776_v36  ;;  %v4319_v56 = vrot.slane %v8739_v33, 2 }
 0x2bd   : > { %v8835_v49 = vsel %vm1250_vm1, %v3760_v24, %v3761_v39  ;;  %v8868_v39 = vsel %vm1250_vm1, %v3771_v25, %v3773_v44  ;;  %v3778_v24 = vrot.slane %v8678_v50, 2  ;;  %v8887_v50 = vsel %vm1250_vm1, %v3780_v1, %v3781_v37  ;;  %v586_v44 = vld [vmem:[%s9222_s6 + $0x38] sm:$0xff] }
 0x2be   : > { %6610 = vmatmul.mubr.msk.f32.gmra.mrb[32].mxu1 %vm699_vm0, %v8816_v13  ;;  %v8892_v25 = vsel %vm1250_vm1, %v3781_v37, %v3783_v21  ;;  %v587_v37 = vld [vmem:[%s9222_s6 + $0x40] sm:$0xff]  ;;  %v9355_v21 = vld [vmem:[#allocation10_spill] sm:$0xff] }
 0x2bf   : > { %6612 = vmatprep.mubr.msk.f32.mxu1 %vm699_vm0, %v8822_v15  ;;  %v8881_v63 = vsel %vm1250_vm1, %v3776_v36, %v3778_v24 }
 0x2c2   : > { %6613 = vmatmul.mubr.msk.f32.gmra.mrb[34].mxu1 %vm699_vm0, %v8829_v34 }
 0x2c3   : > { %6615 = vmatprep.mubr.msk.f32.mxu1 %vm699_vm0, %v8835_v49 }
 0x2c6   : > { %6616 = vmatmul.mubr.msk.f32.gmra.mrb[36].mxu1 %vm699_vm0, %v8842_v11 }
 0x2c7   : > { %6618 = vmatprep.mubr.msk.f32.mxu1 %vm699_vm0, %v8848_v38 }
 0x2ca   : > { %6619 = vmatmul.mubr.msk.f32.gmra.mrb[38].mxu1 %vm699_vm0, %v8855_v47 }
 0x2cb   : > { %6621 = vmatprep.mubr.msk.f32.mxu1 %vm699_vm0, %v8861_v32 }
 0x2ce   : > { %6622 = vmatmul.mubr.msk.f32.gmra.mrb[40].mxu1 %vm699_vm0, %v8868_v39 }
 0x2cf   : > { %6624 = vmatprep.mubr.msk.f32.mxu1 %vm699_vm0, %v8874_v48 }
 0x2d2   : > { %6625 = vmatmul.mubr.msk.f32.gmra.mrb[42].mxu1 %vm699_vm0, %v8881_v63 }
 0x2d3   : > { %6627 = vmatprep.mubr.msk.f32.mxu1 %vm699_vm0, %v8887_v50 }
 0x2d6   : > { %6628 = vmatmul.mubr.msk.f32.gmra.mrb[44].mxu1 %vm699_vm0, %v8892_v25 }
 0x2d7   : > { %6632 = vmatprep.mubr.msk.f32.mxu1 %vm699_vm0, %v8469_v40  ;;  %v8930_v40 = vmax.f32 %v8695_v27, 0.0  ;;  %v4149_v27 = vrot.slane %v8739_v33, 1 }
 0x2da   : > { %6633 = vmatmul.mubr.msk.f32.vlgmr.msra.gmra.mrb[30].mxu1 %vm699_vm0, %v8482_v2  ;;  %v585_v2 = vld [vmem:[%s9222_s6 + $0x30] sm:$0xff] }
 0x2db   : > { %6657 = vmatpush3.msra.mxu1 %v583_v55  ;;  %6635 = vmatprep.mubr.msk.f32.mxu1 %vm699_vm0, %v8524_v16 }
 0x2dc   : > { %6682 = vmatprep.subr.mxu1 %v584_v12 }
 0x2de   : > { %6636 = vmatmul.mubr.msk.f32.gmra.mrb[32].mxu1 %vm699_vm0, %v8497_v45 }
 0x2df   : > { %6638 = vmatprep.mubr.msk.f32.mxu1 %vm699_vm0, %v8546_v61 }
 0x2e2   : > { %6639 = vmatmul.mubr.msk.f32.gmra.mrb[34].mxu1 %vm699_vm0, %v8558_v20 }
 0x2e3   : > { %6641 = vmatprep.mubr.msk.f32.mxu1 %vm699_vm0, %v8593_v6 }
 0x2e6   : > { %6642 = vmatmul.mubr.msk.f32.gmra.mrb[36].mxu1 %vm699_vm0, %v8577_v58 }
 0x2e7   : > { %6644 = vmatprep.mubr.msk.f32.mxu1 %vm699_vm0, %v8605_v29 }
 0x2ea   : > { %6645 = vmatmul.mubr.msk.f32.gmra.mrb[38].mxu1 %vm699_vm0, %v8622_v31 }
 0x2eb   : > { %6647 = vmatprep.mubr.msk.f32.mxu1 %vm699_vm0, %v8657_v43 }
 0x2ee   : > { %6648 = vmatmul.mubr.msk.f32.gmra.mrb[40].mxu1 %vm699_vm0, %v8641_v35 }
 0x2ef   : > { %6650 = vmatprep.mubr.msk.f32.mxu1 %vm699_vm0, %v8669_v28 }
 0x2f2   : > { %6651 = vmatmul.mubr.msk.f32.gmra.mrb[42].mxu1 %vm699_vm0, %v8686_v9 }
 0x2f3   : > { %6653 = vmatprep.mubr.msk.f32.mxu1 %vm699_vm0, %v8728_v26 }
 0x2f6   : > { %6654 = vmatmul.mubr.msk.f32.gmra.mrb[44].mxu1 %vm699_vm0, %v8930_v40 }
 0x2f7   : > { %6658 = vmatprep.mubr.msk.f32.mxu1 %vm699_vm0, %v8513_v62  ;;  %v4146_v62 = vrot.slane %v8728_v26, 1 }
 0x2fa   : > { %6659 = vmatmul.mubr.msk.f32.vlgmr.msra.gmra.mrb[30].mxu1 %vm699_vm0, %v8532_v52  ;;  %v4147_v52 = vrot.slane %v8930_v40, 1 }
 0x2fb   : > { %6683 = vmatpush3.msra.mxu1 %v584_v12  ;;  %6661 = vmatprep.mubr.msk.f32.mxu1 %vm699_vm0, %v8542_v17 }
 0x2fc   : > { %6708 = vmatprep.subr.mxu1 %v585_v2  ;;  %v4148_v55 = vsel %vm628_vm2, %v4146_v62, %v4147_v52  ;;  %v4150_v8 = vsel %vm628_vm2, %v4147_v52, %v4149_v27  ;;  %v9356_v27 = vld [vmem:[#allocation14_spill] sm:$0xff] }
 0x2fe   : > { %6662 = vmatmul.mubr.msk.f32.gmra.mrb[32].mxu1 %vm699_vm0, %v8569_v0 }
 0x2ff   : > { %6664 = vmatprep.mubr.msk.f32.mxu1 %vm699_vm0, %v8582_v60 }
 0x302   : > { %6665 = vmatmul.mubr.msk.f32.gmra.mrb[34].mxu1 %vm699_vm0, %v8585_v30 }
 0x303   : > { %6667 = vmatprep.mubr.msk.f32.mxu1 %vm699_vm0, %v8610_v10 }
 0x306   : > { %6668 = vmatmul.mubr.msk.f32.gmra.mrb[36].mxu1 %vm699_vm0, %v8633_v3 }
 0x307   : > { %6670 = vmatprep.mubr.msk.f32.mxu1 %vm699_vm0, %v8646_v4 }
 0x30a   : > { %6671 = vmatmul.mubr.msk.f32.gmra.mrb[38].mxu1 %vm699_vm0, %v8649_v5 }
 0x30b   : > { %6673 = vmatprep.mubr.msk.f32.mxu1 %vm699_vm0, %v8674_v59 }
 0x30e   : > { %6674 = vmatmul.mubr.msk.f32.gmra.mrb[40].mxu1 %vm699_vm0, %v8699_v18 }
 0x30f   : > { %6676 = vmatprep.mubr.msk.f32.mxu1 %vm699_vm0, %v8710_v53 }
 0x312   : > { %6677 = vmatmul.mubr.msk.f32.gmra.mrb[42].mxu1 %vm699_vm0, %v8713_v19 }
 0x313   : > { %6679 = vmatprep.mubr.msk.f32.mxu1 %vm699_vm0, %v4148_v55 }
 0x316   : > { %6680 = vmatmul.mubr.msk.f32.gmra.mrb[44].mxu1 %vm699_vm0, %v4150_v8 }
 0x317   : > { %6684 = vmatprep.mubr.msk.f32.mxu1 %vm699_vm0, %v8809_v54  ;;  %v4316_v54 = vrot.slane %v8728_v26, 2 }
 0x31a   : > { %6685 = vmatmul.mubr.msk.f32.vlgmr.msra.gmra.mrb[30].mxu1 %vm699_vm0, %v8816_v13  ;;  %v4317_v13 = vrot.slane %v8930_v40, 2 }
 0x31b   : > { %6709 = vmatpush3.msra.mxu1 %v585_v2  ;;  %6687 = vmatprep.mubr.msk.f32.mxu1 %vm699_vm0, %v8822_v15 }
 0x31c   : > { %6734 = vmatprep.subr.mxu1 %v586_v44  ;;  %v4318_v36 = vsel %vm1250_vm1, %v4316_v54, %v4317_v13  ;;  %v4320_v24 = vsel %vm1250_vm1, %v4317_v13, %v4319_v56  ;;  %v9357_v54 = vld [vmem:[#allocation13_spill] sm:$0xff] }
 0x31e   : > { %6688 = vmatmul.mubr.msk.f32.gmra.mrb[32].mxu1 %vm699_vm0, %v8829_v34 }
 0x31f   : > { %6690 = vmatprep.mubr.msk.f32.mxu1 %vm699_vm0, %v8835_v49 }
 0x322   : > { %6691 = vmatmul.mubr.msk.f32.gmra.mrb[34].mxu1 %vm699_vm0, %v8842_v11 }
 0x323   : > { %6693 = vmatprep.mubr.msk.f32.mxu1 %vm699_vm0, %v8848_v38 }
 0x326   : > { %6694 = vmatmul.mubr.msk.f32.gmra.mrb[36].mxu1 %vm699_vm0, %v8855_v47 }
 0x327   : > { %6696 = vmatprep.mubr.msk.f32.mxu1 %vm699_vm0, %v8861_v32 }
 0x32a   : > { %6697 = vmatmul.mubr.msk.f32.gmra.mrb[38].mxu1 %vm699_vm0, %v8868_v39 }
 0x32b   : > { %6699 = vmatprep.mubr.msk.f32.mxu1 %vm699_vm0, %v8874_v48 }
 0x32e   : > { %6700 = vmatmul.mubr.msk.f32.gmra.mrb[40].mxu1 %vm699_vm0, %v8881_v63 }
 0x32f   : > { %6702 = vmatprep.mubr.msk.f32.mxu1 %vm699_vm0, %v8887_v50 }
 0x332   : > { %6703 = vmatmul.mubr.msk.f32.gmra.mrb[42].mxu1 %vm699_vm0, %v8892_v25 }
 0x333   : > { %6705 = vmatprep.mubr.msk.f32.mxu1 %vm699_vm0, %v4318_v36 }
 0x336   : > { %6706 = vmatmul.mubr.msk.f32.gmra.mrb[44].mxu1 %vm699_vm0, %v4320_v24 }
 0x337   : > { %6710 = vmatprep.mubr.msk.f32.mxu1 %vm699_vm0, %v8524_v16 }
 0x33a   : > { %6711 = vmatmul.mubr.msk.f32.vlgmr.msra.gmra.mrb[30].mxu1 %vm699_vm0, %v8497_v45  ;;  %v9113_v45 = vld [vmem:[%s9224_s8] ss:$0 sm:$0xff] }
 0x33b   : > { %6735 = vmatpush3.msra.mxu1 %v586_v44  ;;  %6713 = vmatprep.mubr.msk.f32.mxu1 %vm699_vm0, %v8546_v61 }
 0x33c   : > { %6760 = vmatprep.subr.mxu1 %v587_v37 }
 0x33e   : > { %6714 = vmatmul.mubr.msk.f32.gmra.mrb[32].mxu1 %vm699_vm0, %v8558_v20 }
 0x33f   : > { %6716 = vmatprep.mubr.msk.f32.mxu1 %vm699_vm0, %v8593_v6 }
 0x342   : > { %6717 = vmatmul.mubr.msk.f32.gmra.mrb[34].mxu1 %vm699_vm0, %v8577_v58 }
 0x343   : > { %6719 = vmatprep.mubr.msk.f32.mxu1 %vm699_vm0, %v8605_v29 }
 0x346   : > { %6720 = vmatmul.mubr.msk.f32.gmra.mrb[36].mxu1 %vm699_vm0, %v8622_v31 }
 0x347   : > { %6722 = vmatprep.mubr.msk.f32.mxu1 %vm699_vm0, %v8657_v43 }
 0x34a   : > { %6723 = vmatmul.mubr.msk.f32.gmra.mrb[38].mxu1 %vm699_vm0, %v8641_v35  ;;  %v9108_v35 = vld [vmem:[%s9223_s7] ss:$0 sm:$0xff] }
 0x34b   : > { %6725 = vmatprep.mubr.msk.f32.mxu1 %vm699_vm0, %v8669_v28 }
 0x34e   : > { %6726 = vmatmul.mubr.msk.f32.gmra.mrb[40].mxu1 %vm699_vm0, %v8686_v9 }
 0x34f   : > { %6728 = vmatprep.mubr.msk.f32.mxu1 %vm699_vm0, %v8728_v26 }
 0x352   : > { %6729 = vmatmul.mubr.msk.f32.gmra.mrb[42].mxu1 %vm699_vm0, %v8930_v40 }
 0x353   : > { %6731 = vmatprep.mubr.msk.f32.mxu1 %vm699_vm0, %v8748_v22 }
 0x356   : > { %6732 = vmatmul.mubr.msk.f32.gmra.mrb[44].mxu1 %vm699_vm0, %v8754_v51 }
 0x357   : > { %6736 = vmatprep.mubr.msk.f32.mxu1 %vm699_vm0, %v8542_v17 }
 0x35a   : > { %6737 = vmatmul.mubr.msk.f32.vlgmr.msra.gmra.mrb[30].mxu1 %vm699_vm0, %v8569_v0 }
 0x35b   : > { %6761 = vmatpush3.msra.mxu1 %v587_v37  ;;  %6739 = vmatprep.mubr.msk.f32.mxu1 %vm699_vm0, %v8582_v60 }
 0x35e   : > { %6740 = vmatmul.mubr.msk.f32.gmra.mrb[32].mxu1 %vm699_vm0, %v8585_v30 }
 0x35f   : > { %6742 = vmatprep.mubr.msk.f32.mxu1 %vm699_vm0, %v8610_v10 }
 0x362   : > { %6743 = vmatmul.mubr.msk.f32.gmra.mrb[34].mxu1 %vm699_vm0, %v8633_v3 }
 0x363   : > { %6745 = vmatprep.mubr.msk.f32.mxu1 %vm699_vm0, %v8646_v4 }
 0x366   : > { %6746 = vmatmul.mubr.msk.f32.gmra.mrb[36].mxu1 %vm699_vm0, %v8649_v5 }
 0x367   : > { %6748 = vmatprep.mubr.msk.f32.mxu1 %vm699_vm0, %v8674_v59 }
 0x36a   : > { %6749 = vmatmul.mubr.msk.f32.gmra.mrb[38].mxu1 %vm699_vm0, %v8699_v18 }
 0x36b   : > { %6751 = vmatprep.mubr.msk.f32.mxu1 %vm699_vm0, %v8710_v53 }
 0x36e   : > { %6752 = vmatmul.mubr.msk.f32.gmra.mrb[40].mxu1 %vm699_vm0, %v8713_v19 }
 0x36f   : > { %6754 = vmatprep.mubr.msk.f32.mxu1 %vm699_vm0, %v4148_v55 }
 0x372   : > { %6755 = vmatmul.mubr.msk.f32.gmra.mrb[42].mxu1 %vm699_vm0, %v4150_v8 }
 0x373   : > { %6757 = vmatprep.mubr.msk.f32.mxu1 %vm699_vm0, %v8767_v23 }
 0x376   : > { %6758 = vmatmul.mubr.msk.f32.gmra.mrb[44].mxu1 %vm699_vm0, %v8770_v14 }
 0x377   : > { %6762 = vmatprep.mubr.msk.f32.mxu1 %vm699_vm0, %v8822_v15 }
 0x37a   : > { %6763 = vmatmul.mubr.msk.f32.vlgmr.msra.gmra.mrb[30].mxu1 %vm699_vm0, %v8829_v34 }
 0x37b   : > { %6765 = vmatprep.mubr.msk.f32.mxu1 %vm699_vm0, %v8835_v49 }
 0x37e   : > { %6766 = vmatmul.mubr.msk.f32.gmra.mrb[32].mxu1 %vm699_vm0, %v8842_v11 }
 0x37f   : > { %6768 = vmatprep.mubr.msk.f32.mxu1 %vm699_vm0, %v8848_v38 }
 0x382   : > { %6769 = vmatmul.mubr.msk.f32.gmra.mrb[34].mxu1 %vm699_vm0, %v8855_v47 }
 0x383   : > { %6771 = vmatprep.mubr.msk.f32.mxu1 %vm699_vm0, %v8861_v32 }
 0x386   : > { %6772 = vmatmul.mubr.msk.f32.gmra.mrb[36].mxu1 %vm699_vm0, %v8868_v39  ;;  %v9354_v39 = vld [vmem:[#allocation11_spill] sm:$0xff] }
 0x387   : > { %6774 = vmatprep.mubr.msk.f32.mxu1 %vm699_vm0, %v8874_v48 }
 0x38a   : > { %6775 = vmatmul.mubr.msk.f32.gmra.mrb[38].mxu1 %vm699_vm0, %v8881_v63 }
 0x38b   : > { %6777 = vmatprep.mubr.msk.f32.mxu1 %vm699_vm0, %v8887_v50 }
 0x38e   : > { %6778 = vmatmul.mubr.msk.f32.gmra.mrb[40].mxu1 %vm699_vm0, %v8892_v25 }
 0x38f   : > { %6780 = vmatprep.mubr.msk.f32.mxu1 %vm699_vm0, %v4318_v36 }
 0x392   : > { %6781 = vmatmul.mubr.msk.f32.gmra.mrb[42].mxu1 %vm699_vm0, %v4320_v24 }
 0x393   : > { %6783 = vmatprep.mubr.msk.f32.mxu1 %vm699_vm0, %v8773_v7 }
 0x396   : > { %6784 = vmatmul.mubr.msk.f32.gmra.mrb[44].mxu1 %vm699_vm0, %v8776_v42  ;;  %v9353_v42 = vld [vmem:[#allocation7_spill] sm:$0xff] }
 0x44d   : > { %v6764_v58 = vpop.f32.mrb[30].mxu1 }
 0x44e   : > { %v5002_v16 = vmul.f32 %v6764_v58, %v9108_v35  ;;  %v4899_v17 = vpop.f32.mrb[31].mxu1 }
 0x44f   : > { %v5001_v61 = vmul.f32 %v9108_v35, %v4899_v17  ;;  %v9358_v17 = vld [vmem:[#allocation17_spill] sm:$0xff] }
 0x450   : > { %v5025_v20 = vadd.f32 %v9113_v45, %v5002_v16 }
 0x451   : > { %v5024_v0 = vadd.f32 %v9113_v45, %v5001_v61  ;;  %v6767_v60 = vpop.f32.mrb[32].mxu1 }
 0x452   : > { %v5057_v30 = vadd.f32 %v5025_v20, %v7437_v46  ;;  %v5004_v6 = vmul.f32 %v6767_v60, %v9108_v35  ;;  %v4909_v29 = vpop.f32.mrb[33].mxu1  ;;  %v9359_v60 = vld [vmem:[#allocation16_spill] sm:$0xff] }
 0x453   : > { %v5056_v10 = vadd.f32 %v5024_v0, %v7420_v41  ;;  %v5003_v31 = vmul.f32 %v9108_v35, %v4909_v29  ;;  %v9351_v41 = vld [vmem:[#allocation4_spill] sm:$0xff] }
 0x454   : > { %v5073_v3 = vmax.f32 %v5057_v30, 0.0  ;;  %v5027_v4 = vadd.f32 %v9113_v45, %v5004_v6 }
 0x455   : > { %v5072_v5 = vmax.f32 %v5056_v10, 0.0  ;;  %v5026_v46 = vadd.f32 %v9113_v45, %v5003_v31  ;;  %v6770_v43 = vpop.f32.mrb[34].mxu1 }
 0x456   : > { %5089 = vst.msk [vmem:[%s9125_s17 + $0x8] sm:$0xff] %vm699_vm0, %v5073_v3  ;;  %v5059_v28 = vadd.f32 %v5027_v4, %v9333_v57  ;;  %v5006_v59 = vmul.f32 %v6770_v43, %v9108_v35  ;;  %v4919_v9 = vpop.f32.mrb[35].mxu1  ;;  %v9352_v57 = vld [vmem:[#allocation8_spill] sm:$0xff] }
 0x457   : > { %5088 = vst.msk [vmem:[%s9125_s17] sm:$0xff] %vm699_vm0, %v5072_v5  ;;  %v5058_v18 = vadd.f32 %v5026_v46, %v9351_v41  ;;  %v5005_v53 = vmul.f32 %v9108_v35, %v4919_v9  ;;  %v9360_v5 = vld [vmem:[#allocation20_spill] sm:$0xff] }
 0x458   : > { %v5075_v19 = vmax.f32 %v5059_v28, 0.0  ;;  %v5029_v26 = vadd.f32 %v9113_v45, %v5006_v59  ;;  %v9361_v59 = vld [vmem:[#allocation19_spill] sm:$0xff] }
 0x459   : > { %v5074_v33 = vmax.f32 %v5058_v18, 0.0  ;;  %v5028_v22 = vadd.f32 %v9113_v45, %v5005_v53  ;;  %v6773_v51 = vpop.f32.mrb[36].mxu1 }
 0x45a   : > { %5091 = vst.msk [vmem:[%s9125_s17 + $0x18] sm:$0xff] %vm699_vm0, %v5075_v19  ;;  %v5061_v23 = vadd.f32 %v5029_v26, %v9352_v57  ;;  %v5008_v14 = vmul.f32 %v6773_v51, %v9108_v35  ;;  %v4929_v7 = vpop.f32.mrb[37].mxu1  ;;  %v9363_v51 = vld [vmem:[#allocation22_spill] sm:$0xff] }
 0x45b   : > { %5090 = vst.msk [vmem:[%s9125_s17 + $0x10] sm:$0xff] %vm699_vm0, %v5074_v33  ;;  %v5060_v15 = vadd.f32 %v5028_v22, %v9353_v42  ;;  %v5007_v34 = vmul.f32 %v9108_v35, %v4929_v7  ;;  %v9362_v33 = vld [vmem:[#allocation31_spill] sm:$0xff] }
 0x45c   : > { %v5077_v49 = vmax.f32 %v5061_v23, 0.0  ;;  %v5031_v11 = vadd.f32 %v9113_v45, %v5008_v14 }
 0x45d   : > { %v5076_v38 = vmax.f32 %v5060_v15, 0.0  ;;  %v5030_v47 = vadd.f32 %v9113_v45, %v5007_v34  ;;  %v6776_v32 = vpop.f32.mrb[38].mxu1 }
 0x45e   : > { %5093 = vst.msk [vmem:[%s9125_s17 + $0x28] sm:$0xff] %vm699_vm0, %v5077_v49  ;;  %v5063_v48 = vadd.f32 %v5031_v11, %v9354_v39  ;;  %v5010_v1 = vmul.f32 %v6776_v32, %v9108_v35  ;;  %v4939_v63 = vpop.f32.mrb[39].mxu1 }
 0x45f   : > { %5092 = vst.msk [vmem:[%s9125_s17 + $0x20] sm:$0xff] %vm699_vm0, %v5076_v38  ;;  %v5062_v50 = vadd.f32 %v5030_v47, %v9355_v21  ;;  %v5009_v25 = vmul.f32 %v9108_v35, %v4939_v63 }
 0x460   : > { %v5079_v12 = vmax.f32 %v5063_v48, 0.0  ;;  %v5033_v40 = vadd.f32 %v9113_v45, %v5010_v1 }
 0x461   : > { %v5078_v2 = vmax.f32 %v5062_v50, 0.0  ;;  %v5032_v62 = vadd.f32 %v9113_v45, %v5009_v25  ;;  %v6779_v52 = vpop.f32.mrb[40].mxu1 }
 0x462   : > { %5095 = vst.msk [vmem:[%s9125_s17 + $0x38] sm:$0xff] %vm699_vm0, %v5079_v12  ;;  %v5065_v55 = vadd.f32 %v5033_v40, %v9356_v27  ;;  %v5012_v8 = vmul.f32 %v6779_v52, %v9108_v35  ;;  %v4949_v44 = vpop.f32.mrb[41].mxu1 }
 0x463   : > { %5094 = vst.msk [vmem:[%s9125_s17 + $0x30] sm:$0xff] %vm699_vm0, %v5078_v2  ;;  %v5064_v13 = vadd.f32 %v5032_v62, %v9357_v54  ;;  %v5011_v56 = vmul.f32 %v9108_v35, %v4949_v44 }
 0x464   : > { %v5081_v36 = vmax.f32 %v5065_v55, 0.0  ;;  %v5035_v24 = vadd.f32 %v9113_v45, %v5012_v8 }
 0x465   : > { %v5080_v37 = vmax.f32 %v5064_v13, 0.0  ;;  %v5034_v58 = vadd.f32 %v9113_v45, %v5011_v56  ;;  %v6782_v16 = vpop.f32.mrb[42].mxu1 }
 0x466   : > { %5097 = vst.msk [vmem:[%s9125_s17 + $0x48] sm:$0xff] %vm699_vm0, %v5081_v36  ;;  %v5067_v61 = vadd.f32 %v5035_v24, %v9358_v17  ;;  %v5014_v20 = vmul.f32 %v6782_v16, %v9108_v35  ;;  %v4959_v0 = vpop.f32.mrb[43].mxu1 }
 0x467   : > { %5096 = vst.msk [vmem:[%s9125_s17 + $0x40] sm:$0xff] %vm699_vm0, %v5080_v37  ;;  %v5066_v30 = vadd.f32 %v5034_v58, %v9359_v60  ;;  %v5013_v6 = vmul.f32 %v9108_v35, %v4959_v0 }
 0x468   : > { %v5083_v29 = vmax.f32 %v5067_v61, 0.0  ;;  %v5037_v10 = vadd.f32 %v9113_v45, %v5014_v20 }
 0x469   : > { %v5082_v31 = vmax.f32 %v5066_v30, 0.0  ;;  %v5036_v3 = vadd.f32 %v9113_v45, %v5013_v6  ;;  %v6785_v4 = vpop.f32.mrb[44].mxu1 }
 0x46a   : > { %5099 = vst.msk [vmem:[%s9125_s17 + $0x58] sm:$0xff] %vm699_vm0, %v5083_v29  ;;  %v5069_v46 = vadd.f32 %v5037_v10, %v9360_v5  ;;  %v5016_v43 = vmul.f32 %v6785_v4, %v9108_v35  ;;  %v4969_v28 = vpop.f32.mrb[45].mxu1 }
 0x46b   : > { %5098 = vst.msk [vmem:[%s9125_s17 + $0x50] sm:$0xff] %vm699_vm0, %v5082_v31  ;;  %v5068_v9 = vadd.f32 %v5036_v3, %v9361_v59  ;;  %v5015_v41 = vmul.f32 %v9108_v35, %v4969_v28 }
 0x46c   : > { %v5085_v18 = vmax.f32 %v5069_v46, 0.0  ;;  %v5039_v53 = vadd.f32 %v9113_v45, %v5016_v43 }
 0x46d   : > { %v5084_v19 = vmax.f32 %v5068_v9, 0.0  ;;  %v5038_v26 = vadd.f32 %v9113_v45, %v5015_v41 }
 0x46e   : > { %5101 = vst.msk [vmem:[%s9125_s17 + $0x68] sm:$0xff] %vm699_vm0, %v5085_v18  ;;  %v5071_v22 = vadd.f32 %v5039_v53, %v9362_v33 }
 0x46f   : > { %5100 = vst.msk [vmem:[%s9125_s17 + $0x60] sm:$0xff] %vm699_vm0, %v5084_v19  ;;  %v5070_v57 = vadd.f32 %v5038_v26, %v9363_v51 }
 0x470   : > { %v5087_v23 = vmax.f32 %v5071_v22, 0.0 }
 0x471   : > { %v5086_v14 = vmax.f32 %v5070_v57, 0.0 }
 0x472   : > { %5103 = vst.msk [vmem:[%s9125_s17 + $0x78] sm:$0xff] %vm699_vm0, %v5087_v23 }
 0x473   : > { %5102 = vst.msk [vmem:[%s9125_s17 + $0x70] sm:$0xff] %vm699_vm0, %v5086_v14 }
 0x474 PF: > { %s19_s13 = sadd.s32 1, %s7234_s13   ;;  %s9364_s24 = sld [smem:[#allocation2_spill]] }
 0x475   : > { %p16_p13 = scmp.ge.s32.totalorder %s19_s13, 6   ;;  %s9365_s30 = smov %s7226_s11 }
 0x476   : > { %s9366_s10 = smov %s7230_s12  ;;  %s9367_s11 = smov %s9370_s14 }
 0x477   :  { %18 = sbr.rel (!%p16_p13) target bundleno = 3 (0x3), region = 93 }
 0x47a   : > { %s9368_s12 = smov %s9364_s24 }

</bundles_post_ra>
